<compile_context>
chip_gen: v7x
topology: tpu7x:2x2x1
jax: 0.10.0
libtpu: 0.0.40
codegen_flags: <defaults>
</compile_context>

<pallas_src>
import math

import jax
import jax.numpy as jnp
from jax.experimental import pallas as pl
from jax.experimental.pallas import tpu as pltpu

# ---------------- hyper-params (consistent with the module's __init__) ----------------
B = 2
T_F0 = 16          # f0 frames
T_TXT = 8          # phoneme sequence length
F0_MAX = 800.0
SIGMA = 0.1        # FlowMatching sigma (cfm_method == 'CFM')

INNER = 32         # inner_channels
WN_IN = 1          # WN_in_channels
WN_K = 3           # WN_kernel_size
WN_DIL = 2         # WN_dilation_rate
WN_LAYERS = 2      # WN_n_layers
FILTER = 64        # Attn_filter_channels
ATTN_LAYERS = 1    # Attn_n_layers
N_HEADS = 2        # Attn_n_heads
D_HEAD = INNER // N_HEADS
VOCAB = 11         # vocab_size + 1
N_SPEAKERS = 4
GIN = N_SPEAKERS   # gin_channels = n_speakers
DIFF_IN = 16       # Diff_step_embed_in
DIFF_MID = 32      # Diff_step_embed_mid
DIFF_OUT = 32      # Diff_step_embed_out
OUT_CH = 1

PACK_W = 128                 # lane width of the packed parameter buffer
FRAME_W = 16                 # per-frame pack: [xt, f0_mask, pad(6), align_path(Tt)]
BG_W = 32 + T_F0             # per-batch pack: [temb_sin(16), g(4), pad, key_mask(Tt), f0_mask_row(T)]
TXT_W = INNER + 8            # per-token pack: [emb(32), row_mask, pad]


# ============================= packed parameter layout =============================

def _param_layout():
    """Dense shelf packing (first-fit) of every weight into a single (rows, 128) buffer."""
    H, F, L = INNER, FILTER, WN_LAYERS
    entries = []
    for i in range(L):                           # k-major dilated conv, per layer / per gate half
        entries += [(f"wn_ina{i}_w", WN_K * H, H), (f"wn_inb{i}_w", WN_K * H, H)]
    entries += [
        ("ff2_w", F, H),
        ("qkv_w", H, 3 * H),
        ("ff1_w", H, F),
        ("tproj_w", DIFF_OUT, L * H),
        ("fc_t2_w", DIFF_MID, DIFF_OUT),
        ("o_w", H, H),
    ]
    for i in range(L):
        entries += [(f"cond_a{i}_w", H, H), (f"cond_b{i}_w", H, H)]
    for i in range(L - 1):
        entries += [(f"res{i}_w", H, H)]
    for i in range(L):
        entries += [(f"skip{i}_w", H, H)]
    entries += [("p1_w", H, H), ("fc_t1_w", DIFF_IN, DIFF_MID)]
    for i in range(L):
        entries += [(f"g_a{i}_w", GIN, H), (f"g_b{i}_w", GIN, H)]
    entries += [
        ("qkv_b", 1, 3 * H), ("ff1_b", 1, F), ("tproj_b", 1, L * H),
        ("fc_t1_b", 1, DIFF_MID), ("fc_t2_b", 1, DIFF_OUT),
        ("o_b", 1, H), ("ln1_g", 1, H), ("ln1_b", 1, H),
        ("ff2_b", 1, H), ("ln2_g", 1, H), ("ln2_b", 1, H),
        ("pre_w", WN_IN, H), ("pre_b", 1, H),
        ("p1_b", 1, H), ("p2_w", 1, H), ("p2_b", 1, 1),
    ]
    for i in range(L):
        entries += [(f"wn_ina{i}_b", 1, H), (f"wn_inb{i}_b", 1, H)]
    for i in range(L - 1):
        entries += [(f"res{i}_b", 1, H)]
    for i in range(L):
        entries += [(f"skip{i}_b", 1, H)]

    offsets, shelves, next_row = {}, [], 0
    for name, r, c in entries:
        hr = -(-r // 8) * 8                      # 8-sublane aligned shelf height
        cw = -(-c // 8) * 8                      # 8-lane aligned column slot
        placed = None
        for sh in shelves:                       # first-fit into an existing shelf
            if sh[1] >= hr and sh[2] + cw <= PACK_W:
                placed = sh
                break
        if placed is None:
            placed = [next_row, hr, 0]
            shelves.append(placed)
            next_row += hr
        offsets[name] = (placed[0], placed[2], r, c)
        placed[2] += cw
    return offsets, next_row


OFFSETS, PACK_ROWS = _param_layout()


def init_params(key):
    cnt = [0]

    def nk():
        cnt[0] += 1
        return jax.random.fold_in(key, cnt[0])

    pack = jnp.zeros((PACK_ROWS, PACK_W), jnp.float32)
    for name, (r0, c0, r, c) in OFFSETS.items():
        if name.endswith("_w"):
            v = 0.02 * jax.random.normal(nk(), (r, c), dtype=jnp.float32)
        elif name in ("ln1_g", "ln2_g"):
            v = jnp.ones((r, c), jnp.float32)
        else:
            v = jnp.zeros((r, c), jnp.float32)
        pack = pack.at[r0:r0 + r, c0:c0 + c].set(v)

    return {
        "wpack": pack,
        "text_emb": 0.02 * jax.random.normal(nk(), (VOCAB, INNER), dtype=jnp.float32),
        "emb_g": 0.02 * jax.random.normal(nk(), (N_SPEAKERS, GIN), dtype=jnp.float32),
    }


# ============================= fused Pallas kernel =============================

def _w(wp_ref, name):
    r0, c0, r, c = OFFSETS[name]
    return wp_ref[r0:r0 + r, c0:c0 + c]


def _linear(x, wp_ref, name, act=None):
    y = (jnp.dot(x, _w(wp_ref, name + "_w"), preferred_element_type=jnp.float32)
         + _w(wp_ref, name + "_b"))
    if act == "swish":
        y = y * jax.nn.sigmoid(y)
    elif act == "relu":
        y = jnp.maximum(y, 0.0)
    elif act == "mish":
        y = y * jnp.tanh(jax.nn.softplus(y))
    return y


def _layer_norm(x, g, b, eps=1e-5):
    m = jnp.mean(x, axis=-1, keepdims=True)
    d = x - m
    v = jnp.mean(d * d, axis=-1, keepdims=True)
    return d * jax.lax.rsqrt(v + eps) * g + b


def _vf_kernel(frame_ref, bg_ref, txt_ref, wp_ref, vt_ref):
    H, T, Tt = INNER, T_F0, T_TXT

    frame = frame_ref[0]                                  # (T, FRAME_W)
    xt = frame[:, 0:1]                                    # (T, 1) CFM sample
    f0m = frame[:, 1:2]                                   # (T, 1) frame mask
    path = frame[:, 8:8 + Tt]                             # (T, Tt) alignment path

    bg = bg_ref[0]                                        # (1, BG_W)
    temb_sin = bg[:, 0:DIFF_IN]                           # (1, 16)
    g_emb = bg[:, DIFF_IN:DIFF_IN + GIN]                  # (1, 4)
    key_mask = bg[:, 24:24 + Tt]                          # (1, Tt)
    f0m_row = bg[:, 32:32 + T]                            # (1, T)

    txt = txt_ref[0]                                      # (Tt, TXT_W)
    h = txt[:, :H]                                        # masked scaled phoneme embeddings
    tm_col = txt[:, H:H + 1]                              # (Tt, 1)

    # ---- diffusion-step embedding MLP (swish) ----
    temb = _linear(temb_sin, wp_ref, "fc_t1", act="swish")
    temb = _linear(temb, wp_ref, "fc_t2", act="swish")    # (1, DIFF_OUT)

    # ---- pre: Conv1d(1, H, 1) as an outer product ----
    x = (xt * _w(wp_ref, "pre_w") + _w(wp_ref, "pre_b")) * f0m   # (T, H)

    # ---- text encoder ----
    # TODO(synk): reference TextEncoder (VITS rel-pos MHA + conv FFN, dropout) source not
    # provided; a same-shaped standard MHA + FFN encoder (eval mode) is implemented.
    scale = 1.0 / math.sqrt(D_HEAD)
    neg = (key_mask - 1.0) * 1e9                          # additive key mask (1, Tt)
    for _ in range(ATTN_LAYERS):
        qkv = _linear(h, wp_ref, "qkv")                   # (Tt, 3H)
        heads = []
        for hh in range(N_HEADS):
            q = qkv[:, hh * D_HEAD:(hh + 1) * D_HEAD]
            k = qkv[:, H + hh * D_HEAD:H + (hh + 1) * D_HEAD]
            v = qkv[:, 2 * H + hh * D_HEAD:2 * H + (hh + 1) * D_HEAD]
            s = jax.lax.dot_general(q, k, (((1,), (1,)), ((), ())),
                                    preferred_element_type=jnp.float32) * scale + neg
            p = jax.nn.softmax(s, axis=-1)
            heads.append(jnp.dot(p, v, preferred_element_type=jnp.float32))
        o = _linear(jnp.concatenate(heads, axis=1), wp_ref, "o")
        h = _layer_norm(h + o, _w(wp_ref, "ln1_g"), _w(wp_ref, "ln1_b"))
        y = _linear(h * tm_col, wp_ref, "ff1", act="relu")
        y = _linear(y, wp_ref, "ff2")
        h = _layer_norm(h + y, _w(wp_ref, "ln2_g"), _w(wp_ref, "ln2_b"))
        h = h * tm_col                                    # (Tt, H)

    # ---- expand phoneme features to frame rate with the duration alignment path ----
    hidden = jnp.dot(path, h, preferred_element_type=jnp.float32)   # (T, H)

    # ---- gated dilated WaveNet ----
    # TODO(synk): exact modules.WN (Diff_step_embed_out / IDs-conditioning variant) not
    # provided; standard gated WN with per-layer timestep add, 1x1 conditioning on IDs and
    # speaker embedding (dropout: eval), [tanh-half | sigmoid-half] gate split.
    tproj = _linear(temb, wp_ref, "tproj")                # (1, WN_LAYERS*H), fused t-proj
    tpos = jax.lax.broadcasted_iota(jnp.int32, (T, 1), 0)
    skip = jnp.zeros((T, H), jnp.float32)
    for i in range(WN_LAYERS):
        dil = WN_DIL ** i
        x_in = x + tproj[:, i * H:(i + 1) * H]            # (T, H)
        # 'same' dilated conv (K=3): sublane rolls (XLU) + edge masks, then ONE K=3H matmul
        # per gate half.
        x_prev = jnp.where(tpos >= dil, pltpu.roll(x_in, shift=dil, axis=0), 0.0)
        x_next = jnp.where(tpos < T - dil, pltpu.roll(x_in, shift=T - dil, axis=0), 0.0)
        x3 = jnp.concatenate([x_prev, x_in, x_next], axis=1)        # (T, 3H)
        a = (_linear(x3, wp_ref, f"wn_ina{i}")
             + jnp.dot(hidden, _w(wp_ref, f"cond_a{i}_w"), preferred_element_type=jnp.float32)
             + jnp.dot(g_emb, _w(wp_ref, f"g_a{i}_w"), preferred_element_type=jnp.float32))
        bsig = (_linear(x3, wp_ref, f"wn_inb{i}")
                + jnp.dot(hidden, _w(wp_ref, f"cond_b{i}_w"), preferred_element_type=jnp.float32)
                + jnp.dot(g_emb, _w(wp_ref, f"g_b{i}_w"), preferred_element_type=jnp.float32))
        acts = jnp.tanh(a) * jax.nn.sigmoid(bsig) * f0m             # (T, H)
        if i < WN_LAYERS - 1:
            x = (x + _linear(acts, wp_ref, f"res{i}")) * f0m
        skip = skip + _linear(acts, wp_ref, f"skip{i}")
    out = skip * f0m

    # ---- proj_1 -> Mish -> proj_2 (1 channel), emitted lane-dense as a (1, T) row ----
    y = _linear(out, wp_ref, "p1", act="mish")
    vt = (jax.lax.dot_general(_w(wp_ref, "p2_w"), y, (((1,), (1,)), ((), ())),
                              preferred_element_type=jnp.float32)
          + _w(wp_ref, "p2_b"))
    vt_ref[0] = vt * f0m_row


# ============================= wrapper-level glue (tiny XLA ops) =============================

def sequence_mask(lengths, max_len):
    return (jnp.arange(max_len)[None, :] < lengths[:, None]).astype(jnp.float32)


def generate_path(duration, mask):
    # duration: (B, 1, Tx); mask: (B, 1, Ty, Tx)  -- VITS commons.generate_path
    ty = mask.shape[2]
    cum = jnp.cumsum(duration, axis=-1)
    path = (jnp.arange(ty, dtype=jnp.float32)[None, None, :, None]
            < cum[:, :, None, :]).astype(mask.dtype)
    path = path - jnp.pad(path, ((0, 0), (0, 0), (0, 0), (1, 0)))[:, :, :, :-1]
    return path * mask


def sinusoidal_pos_emb(x, dim, scale=1000.0):
    # x: (B, 1) -> (B, dim)   (matches SinusoidalPosEmb.forward, squeezed)
    half = dim // 2
    freqs = jnp.exp(jnp.arange(half, dtype=jnp.float32) * -(math.log(10000.0) / (half - 1)))
    arg = scale * x * freqs[None, :]
    return jnp.concatenate([jnp.sin(arg), jnp.cos(arg)], axis=-1)


def flow_matching_forward(params, f0, f0_len, ids, ids_len, ids_dur, g, noise, key_t, key_eps):
    """FlowMatchingModels.forward: returns (ut, vt), each (B, 1, T)."""
    f0n = f0 / F0_MAX                                              # norm_f0 (x1)
    t = jax.random.uniform(key_t, (B, 1, 1), dtype=jnp.float32)
    eps = jax.random.normal(key_eps, f0.shape, dtype=jnp.float32)

    # ConditionalFlowMatcher.sample_location_and_conditional_flow (sigma const) in the wrapper,
    # so x0/x1/eps/t never enter the kernel and ut needs no kernel output.
    xt = t * f0n + (1.0 - t) * noise + SIGMA * eps                 # (B, 1, T)
    ut = f0n - noise                                               # (B, 1, T)

    f0_mask = sequence_mask(f0_len, T_F0)                          # (B, T)
    txt_mask = sequence_mask(ids_len, T_TXT)                       # (B, Tt)

    # TODO(synk): NoteEncoder definition not provided; only the NoteIDs=None branch exists.
    attn_mask = txt_mask[:, None, None, :] * f0_mask[:, None, :, None]
    path = generate_path(ids_dur[:, None, :].astype(jnp.float32), attn_mask)[:, 0]   # (B, T, Tt)

    temb_sin = sinusoidal_pos_emb(t[:, :, 0], DIFF_IN)             # (B, DIFF_IN)
    g_emb = params["emb_g"][g]                                     # (B, GIN)
    txt_emb = params["text_emb"][ids] * math.sqrt(INNER)           # (B, Tt, H)

    zf = lambda *s: jnp.zeros(s, jnp.float32)
    frame_pack = jnp.concatenate(
        [jnp.transpose(xt, (0, 2, 1)), f0_mask[:, :, None], zf(B, T_F0, 6), path], axis=-1)
    bg_pack = jnp.concatenate(
        [temb_sin, g_emb, zf(B, 24 - DIFF_IN - GIN), txt_mask, f0_mask], axis=-1)[:, None, :]
    txt_pack = jnp.concatenate(
        [txt_emb * txt_mask[:, :, None], txt_mask[:, :, None],
         zf(B, T_TXT, TXT_W - INNER - 1)], axis=-1)

    vt = pl.pallas_call(
        _vf_kernel,
        out_shape=jax.ShapeDtypeStruct((B, 1, T_F0), jnp.float32),
        grid=(B,),
        in_specs=[
            pl.BlockSpec((1, T_F0, FRAME_W), lambda b: (b, 0, 0)),
            pl.BlockSpec((1, 1, BG_W), lambda b: (b, 0, 0)),
            pl.BlockSpec((1, T_TXT, TXT_W), lambda b: (b, 0, 0)),
            pl.BlockSpec((PACK_ROWS, PACK_W), lambda b: (0, 0)),   # weights resident across grid
        ],
        out_specs=pl.BlockSpec((1, 1, T_F0), lambda b: (b, 0, 0)),
        compiler_params=pltpu.CompilerParams(
            dimension_semantics=("parallel",),
            vmem_limit_bytes=32 * 1024 * 1024),
    )(frame_pack, bg_pack, txt_pack, params["wpack"])

    return ut, vt


# ============================= main =============================

if __name__ == "__main__":
    key = jax.random.PRNGKey(0)
    k_param, k_f0, k_noise, k_ids, k_t, k_eps = jax.random.split(key, 6)
    params = init_params(k_param)

    f0 = jax.random.uniform(k_f0, (B, 1, T_F0), minval=80.0, maxval=F0_MAX, dtype=jnp.float32)
    noise = jax.random.normal(k_noise, (B, 1, T_F0), dtype=jnp.float32)
    IDs = jax.random.randint(k_ids, (B, T_TXT), 1, VOCAB)
    IDs_dur = jnp.array([[3, 2, 2, 2, 2, 2, 2, 1],
                         [2, 2, 2, 2, 2, 2, 0, 0]], dtype=jnp.int32)
    f0_len = jnp.sum(IDs_dur, axis=1)                              # [16, 12]
    IDs_len = jnp.array([8, 6], dtype=jnp.int32)
    g = jnp.array([0, 1], dtype=jnp.int32)

    fwd = jax.jit(flow_matching_forward)
    ut, vt = fwd(params, f0, f0_len, IDs, IDs_len, IDs_dur, g, noise, k_t, k_eps)
    jax.block_until_ready((ut, vt))
    assert ut.shape == (B, 1, T_F0) and vt.shape == (B, 1, T_F0)
    assert bool(jnp.all(jnp.isfinite(ut))) and bool(jnp.all(jnp.isfinite(vt)))
    print("KERNEL_OK")
</pallas_src>

<mosaic_0001>
module attributes {stable_mosaic.version = 11 : i64} {
  func.func @_vf_kernel(%arg0: i32, %arg1: memref<1x16x16xf32, #tpu.memory_space<vmem>>, %arg2: memref<1x1x48xf32, #tpu.memory_space<vmem>>, %arg3: memref<1x8x40xf32, #tpu.memory_space<vmem>>, %arg4: memref<352x128xf32, #tpu.memory_space<vmem>>, %arg5: memref<1x1x16xf32, #tpu.memory_space<vmem>>) attributes {dimension_semantics = [#tpu.dimension_semantics<parallel>], iteration_bounds = array<i64: 2>, scalar_prefetch = 0 : i64, scratch_operands = 0 : i64, tpu.core_type = #tpu.core_type<tc>, window_params = [{transform_indices = @transform_0, window_bounds = array<i64: 1, 16, 16>}, {transform_indices = @transform_1, window_bounds = array<i64: 1, 1, 48>}, {transform_indices = @transform_2, window_bounds = array<i64: 1, 8, 40>}, {pipeline_mode = #tpu.pipeline_mode<synchronous>, transform_indices = @transform_3, window_bounds = array<i64: 352, 128>}, {transform_indices = @transform_4, window_bounds = array<i64: 1, 1, 16>}]} {
    %c0 = arith.constant 0 : index
    %c0_0 = arith.constant 0 : index
    %c0_1 = arith.constant 0 : index
    %0 = vector.load %arg1[%c0, %c0_0, %c0_1] : memref<1x16x16xf32, #tpu.memory_space<vmem>>, vector<1x16x16xf32>
    %1 = vector.shape_cast %0 : vector<1x16x16xf32> to vector<16x16xf32>
    %2 = vector.extract_strided_slice %1 {offsets = [0, 0], sizes = [16, 1], strides = [1, 1]} : vector<16x16xf32> to vector<16x1xf32>
    %3 = vector.extract_strided_slice %1 {offsets = [0, 1], sizes = [16, 1], strides = [1, 1]} : vector<16x16xf32> to vector<16x1xf32>
    %4 = vector.extract_strided_slice %1 {offsets = [0, 8], sizes = [16, 8], strides = [1, 1]} : vector<16x16xf32> to vector<16x8xf32>
    %c0_2 = arith.constant 0 : index
    %c0_3 = arith.constant 0 : index
    %c0_4 = arith.constant 0 : index
    %5 = vector.load %arg2[%c0_2, %c0_3, %c0_4] : memref<1x1x48xf32, #tpu.memory_space<vmem>>, vector<1x1x48xf32>
    %6 = vector.shape_cast %5 : vector<1x1x48xf32> to vector<1x48xf32>
    %7 = vector.extract_strided_slice %6 {offsets = [0, 0], sizes = [1, 16], strides = [1, 1]} : vector<1x48xf32> to vector<1x16xf32>
    %8 = vector.extract_strided_slice %6 {offsets = [0, 16], sizes = [1, 4], strides = [1, 1]} : vector<1x48xf32> to vector<1x4xf32>
    %9 = vector.extract_strided_slice %6 {offsets = [0, 24], sizes = [1, 8], strides = [1, 1]} : vector<1x48xf32> to vector<1x8xf32>
    %10 = vector.extract_strided_slice %6 {offsets = [0, 32], sizes = [1, 16], strides = [1, 1]} : vector<1x48xf32> to vector<1x16xf32>
    %c0_5 = arith.constant 0 : index
    %c0_6 = arith.constant 0 : index
    %c0_7 = arith.constant 0 : index
    %11 = vector.load %arg3[%c0_5, %c0_6, %c0_7] : memref<1x8x40xf32, #tpu.memory_space<vmem>>, vector<1x8x40xf32>
    %12 = vector.shape_cast %11 : vector<1x8x40xf32> to vector<8x40xf32>
    %13 = vector.extract_strided_slice %12 {offsets = [0, 0], sizes = [8, 32], strides = [1, 1]} : vector<8x40xf32> to vector<8x32xf32>
    %14 = vector.extract_strided_slice %12 {offsets = [0, 32], sizes = [8, 1], strides = [1, 1]} : vector<8x40xf32> to vector<8x1xf32>
    %c256 = arith.constant 256 : index
    %c64 = arith.constant 64 : index
    %15 = vector.load %arg4[%c256, %c64] : memref<352x128xf32, #tpu.memory_space<vmem>>, vector<16x32xf32>
    %cst = arith.constant dense<0.000000e+00> : vector<1x32xf32>
    %16 = tpu.matmul %7, %15, %cst {dimension_numbers = #tpu.dot_dimension_numbers<[1], [0], [0], [1], [0, 0, 1, 1], [], []>} : vector<1x16xf32>, vector<16x32xf32>, vector<1x32xf32> -> vector<1x32xf32>
    %c288 = arith.constant 288 : index
    %c96 = arith.constant 96 : index
    %17 = vector.load %arg4[%c288, %c96] : memref<352x128xf32, #tpu.memory_space<vmem>>, vector<1x32xf32>
    %18 = arith.addf %16, %17 : vector<1x32xf32>
    %19 = arith.negf %18 : vector<1x32xf32>
    %20 = math.exp %19 : vector<1x32xf32>
    %cst_8 = arith.constant 1.000000e+00 : f32
    %21 = vector.broadcast %cst_8 : f32 to vector<1x32xf32>
    %22 = arith.addf %21, %20 : vector<1x32xf32>
    %23 = arith.divf %21, %22 : vector<1x32xf32>
    %24 = arith.mulf %18, %23 : vector<1x32xf32>
    %c192 = arith.constant 192 : index
    %c0_9 = arith.constant 0 : index
    %25 = vector.load %arg4[%c192, %c0_9] : memref<352x128xf32, #tpu.memory_space<vmem>>, vector<32x32xf32>
    %cst_10 = arith.constant dense<0.000000e+00> : vector<1x32xf32>
    %26 = tpu.matmul %24, %25, %cst_10 {dimension_numbers = #tpu.dot_dimension_numbers<[1], [0], [0], [1], [0, 0, 1, 1], [], []>} : vector<1x32xf32>, vector<32x32xf32>, vector<1x32xf32> -> vector<1x32xf32>
    %c296 = arith.constant 296 : index
    %c96_11 = arith.constant 96 : index
    %27 = vector.load %arg4[%c296, %c96_11] : memref<352x128xf32, #tpu.memory_space<vmem>>, vector<1x32xf32>
    %28 = arith.addf %26, %27 : vector<1x32xf32>
    %29 = arith.negf %28 : vector<1x32xf32>
    %30 = math.exp %29 : vector<1x32xf32>
    %cst_12 = arith.constant 1.000000e+00 : f32
    %31 = vector.broadcast %cst_12 : f32 to vector<1x32xf32>
    %32 = arith.addf %31, %30 : vector<1x32xf32>
    %33 = arith.divf %31, %32 : vector<1x32xf32>
    %34 = arith.mulf %28, %33 : vector<1x32xf32>
    %c320 = arith.constant 320 : index
    %c64_13 = arith.constant 64 : index
    %35 = vector.load %arg4[%c320, %c64_13] : memref<352x128xf32, #tpu.memory_space<vmem>>, vector<1x32xf32>
    %36 = vector.broadcast %2 : vector<16x1xf32> to vector<16x32xf32>
    %37 = vector.broadcast %35 : vector<1x32xf32> to vector<16x32xf32>
    %38 = arith.mulf %36, %37 : vector<16x32xf32>
    %c320_14 = arith.constant 320 : index
    %c96_15 = arith.constant 96 : index
    %39 = vector.load %arg4[%c320_14, %c96_15] : memref<352x128xf32, #tpu.memory_space<vmem>>, vector<1x32xf32>
    %40 = vector.broadcast %39 : vector<1x32xf32> to vector<16x32xf32>
    %41 = arith.addf %38, %40 : vector<16x32xf32>
    %42 = vector.broadcast %3 : vector<16x1xf32> to vector<16x32xf32>
    %43 = arith.mulf %41, %42 : vector<16x32xf32>
    %cst_16 = arith.constant 1.000000e+00 : f32
    %44 = vector.broadcast %cst_16 : f32 to vector<1x8xf32>
    %45 = arith.subf %9, %44 : vector<1x8xf32>
    %cst_17 = arith.constant 1.000000e+09 : f32
    %46 = vector.broadcast %cst_17 : f32 to vector<1x8xf32>
    %47 = arith.mulf %45, %46 : vector<1x8xf32>
    %c96_18 = arith.constant 96 : index
    %c32 = arith.constant 32 : index
    %48 = vector.load %arg4[%c96_18, %c32] : memref<352x128xf32, #tpu.memory_space<vmem>>, vector<32x96xf32>
    %cst_19 = arith.constant dense<0.000000e+00> : vector<8x96xf32>
    %49 = tpu.matmul %13, %48, %cst_19 {dimension_numbers = #tpu.dot_dimension_numbers<[1], [0], [0], [1], [0, 0, 1, 1], [], []>} : vector<8x32xf32>, vector<32x96xf32>, vector<8x96xf32> -> vector<8x96xf32>
    %c296_20 = arith.constant 296 : index
    %c0_21 = arith.constant 0 : index
    %50 = vector.load %arg4[%c296_20, %c0_21] : memref<352x128xf32, #tpu.memory_space<vmem>>, vector<1x96xf32>
    %51 = vector.broadcast %50 : vector<1x96xf32> to vector<8x96xf32>
    %52 = arith.addf %49, %51 : vector<8x96xf32>
    %53 = vector.extract_strided_slice %52 {offsets = [0, 0], sizes = [8, 16], strides = [1, 1]} : vector<8x96xf32> to vector<8x16xf32>
    %54 = vector.extract_strided_slice %52 {offsets = [0, 32], sizes = [8, 16], strides = [1, 1]} : vector<8x96xf32> to vector<8x16xf32>
    %55 = vector.extract_strided_slice %52 {offsets = [0, 64], sizes = [8, 16], strides = [1, 1]} : vector<8x96xf32> to vector<8x16xf32>
    %cst_22 = arith.constant dense<0.000000e+00> : vector<8x8xf32>
    %56 = tpu.matmul %53, %54, %cst_22 {dimension_numbers = #tpu.dot_dimension_numbers<[1], [1], [0], [0], [0, 0, 1, 0], [], []>} : vector<8x16xf32>, vector<8x16xf32>, vector<8x8xf32> -> vector<8x8xf32>
    %cst_23 = arith.constant 2.500000e-01 : f32
    %57 = vector.broadcast %cst_23 : f32 to vector<8x8xf32>
    %58 = arith.mulf %56, %57 : vector<8x8xf32>
    %59 = vector.broadcast %47 : vector<1x8xf32> to vector<8x8xf32>
    %60 = arith.addf %58, %59 : vector<8x8xf32>
    %cst_24 = arith.constant dense<0xFF800000> : vector<8xf32>
    %61 = vector.multi_reduction <maximumf>, %60, %cst_24 [1] : vector<8x8xf32> to vector<8xf32>
    %cst_25 = arith.constant 0xFF800000 : f32
    %62 = vector.broadcast %cst_25 : f32 to vector<8xf32>
    %63 = arith.maximumf %62, %61 : vector<8xf32>
    %64 = vector.shape_cast %63 : vector<8xf32> to vector<8x1xf32>
    %65 = vector.broadcast %64 : vector<8x1xf32> to vector<8x8xf32>
    %66 = arith.subf %60, %65 : vector<8x8xf32>
    %67 = math.exp %66 : vector<8x8xf32>
    %cst_26 = arith.constant dense<0.000000e+00> : vector<8xf32>
    %68 = vector.multi_reduction <add>, %67, %cst_26 [1] : vector<8x8xf32> to vector<8xf32>
    %69 = vector.shape_cast %68 : vector<8xf32> to vector<8x1xf32>
    %70 = vector.broadcast %69 : vector<8x1xf32> to vector<8x8xf32>
    %71 = arith.divf %67, %70 : vector<8x8xf32>
    %cst_27 = arith.constant dense<0.000000e+00> : vector<8x16xf32>
    %72 = tpu.matmul %71, %55, %cst_27 {dimension_numbers = #tpu.dot_dimension_numbers<[1], [0], [0], [1], [0, 0, 1, 1], [], []>} : vector<8x8xf32>, vector<8x16xf32>, vector<8x16xf32> -> vector<8x16xf32>
    %73 = vector.extract_strided_slice %52 {offsets = [0, 16], sizes = [8, 16], strides = [1, 1]} : vector<8x96xf32> to vector<8x16xf32>
    %74 = vector.extract_strided_slice %52 {offsets = [0, 48], sizes = [8, 16], strides = [1, 1]} : vector<8x96xf32> to vector<8x16xf32>
    %75 = vector.extract_strided_slice %52 {offsets = [0, 80], sizes = [8, 16], strides = [1, 1]} : vector<8x96xf32> to vector<8x16xf32>
    %cst_28 = arith.constant dense<0.000000e+00> : vector<8x8xf32>
    %76 = tpu.matmul %73, %74, %cst_28 {dimension_numbers = #tpu.dot_dimension_numbers<[1], [1], [0], [0], [0, 0, 1, 0], [], []>} : vector<8x16xf32>, vector<8x16xf32>, vector<8x8xf32> -> vector<8x8xf32>
    %cst_29 = arith.constant 2.500000e-01 : f32
    %77 = vector.broadcast %cst_29 : f32 to vector<8x8xf32>
    %78 = arith.mulf %76, %77 : vector<8x8xf32>
    %79 = vector.broadcast %47 : vector<1x8xf32> to vector<8x8xf32>
    %80 = arith.addf %78, %79 : vector<8x8xf32>
    %cst_30 = arith.constant dense<0xFF800000> : vector<8xf32>
    %81 = vector.multi_reduction <maximumf>, %80, %cst_30 [1] : vector<8x8xf32> to vector<8xf32>
    %cst_31 = arith.constant 0xFF800000 : f32
    %82 = vector.broadcast %cst_31 : f32 to vector<8xf32>
    %83 = arith.maximumf %82, %81 : vector<8xf32>
    %84 = vector.shape_cast %83 : vector<8xf32> to vector<8x1xf32>
    %85 = vector.broadcast %84 : vector<8x1xf32> to vector<8x8xf32>
    %86 = arith.subf %80, %85 : vector<8x8xf32>
    %87 = math.exp %86 : vector<8x8xf32>
    %cst_32 = arith.constant dense<0.000000e+00> : vector<8xf32>
    %88 = vector.multi_reduction <add>, %87, %cst_32 [1] : vector<8x8xf32> to vector<8xf32>
    %89 = vector.shape_cast %88 : vector<8xf32> to vector<8x1xf32>
    %90 = vector.broadcast %89 : vector<8x1xf32> to vector<8x8xf32>
    %91 = arith.divf %87, %90 : vector<8x8xf32>
    %cst_33 = arith.constant dense<0.000000e+00> : vector<8x16xf32>
    %92 = tpu.matmul %91, %75, %cst_33 {dimension_numbers = #tpu.dot_dimension_numbers<[1], [0], [0], [1], [0, 0, 1, 1], [], []>} : vector<8x8xf32>, vector<8x16xf32>, vector<8x16xf32> -> vector<8x16xf32>
    %93 = tpu.concatenate %72, %92 in 1 : vector<8x16xf32>, vector<8x16xf32> -> vector<8x32xf32>
    %c192_34 = arith.constant 192 : index
    %c32_35 = arith.constant 32 : index
    %94 = vector.load %arg4[%c192_34, %c32_35] : memref<352x128xf32, #tpu.memory_space<vmem>>, vector<32x32xf32>
    %cst_36 = arith.constant dense<0.000000e+00> : vector<8x32xf32>
    %95 = tpu.matmul %93, %94, %cst_36 {dimension_numbers = #tpu.dot_dimension_numbers<[1], [0], [0], [1], [0, 0, 1, 1], [], []>} : vector<8x32xf32>, vector<32x32xf32>, vector<8x32xf32> -> vector<8x32xf32>
    %c312 = arith.constant 312 : index
    %c0_37 = arith.constant 0 : index
    %96 = vector.load %arg4[%c312, %c0_37] : memref<352x128xf32, #tpu.memory_space<vmem>>, vector<1x32xf32>
    %97 = vector.broadcast %96 : vector<1x32xf32> to vector<8x32xf32>
    %98 = arith.addf %95, %97 : vector<8x32xf32>
    %99 = arith.addf %13, %98 : vector<8x32xf32>
    %c312_38 = arith.constant 312 : index
    %c32_39 = arith.constant 32 : index
    %100 = vector.load %arg4[%c312_38, %c32_39] : memref<352x128xf32, #tpu.memory_space<vmem>>, vector<1x32xf32>
    %c312_40 = arith.constant 312 : index
    %c64_41 = arith.constant 64 : index
    %101 = vector.load %arg4[%c312_40, %c64_41] : memref<352x128xf32, #tpu.memory_space<vmem>>, vector<1x32xf32>
    %cst_42 = arith.constant dense<0.000000e+00> : vector<8xf32>
    %102 = vector.multi_reduction <add>, %99, %cst_42 [1] : vector<8x32xf32> to vector<8xf32>
    %103 = vector.shape_cast %102 : vector<8xf32> to vector<8x1xf32>
    %cst_43 = arith.constant 3.200000e+01 : f32
    %104 = vector.broadcast %cst_43 : f32 to vector<8x1xf32>
    %105 = arith.divf %103, %104 : vector<8x1xf32>
    %106 = vector.broadcast %105 : vector<8x1xf32> to vector<8x32xf32>
    %107 = arith.subf %99, %106 : vector<8x32xf32>
    %108 = arith.mulf %107, %107 : vector<8x32xf32>
    %cst_44 = arith.constant dense<0.000000e+00> : vector<8xf32>
    %109 = vector.multi_reduction <add>, %108, %cst_44 [1] : vector<8x32xf32> to vector<8xf32>
    %110 = vector.shape_cast %109 : vector<8xf32> to vector<8x1xf32>
    %cst_45 = arith.constant 3.200000e+01 : f32
    %111 = vector.broadcast %cst_45 : f32 to vector<8x1xf32>
    %112 = arith.divf %110, %111 : vector<8x1xf32>
    %cst_46 = arith.constant 9.99999974E-6 : f32
    %113 = vector.broadcast %cst_46 : f32 to vector<8x1xf32>
    %114 = arith.addf %112, %113 : vector<8x1xf32>
    %115 = math.rsqrt %114 : vector<8x1xf32>
    %116 = vector.broadcast %115 : vector<8x1xf32> to vector<8x32xf32>
    %117 = arith.mulf %107, %116 : vector<8x32xf32>
    %118 = vector.broadcast %100 : vector<1x32xf32> to vector<8x32xf32>
    %119 = arith.mulf %117, %118 : vector<8x32xf32>
    %120 = vector.broadcast %101 : vector<1x32xf32> to vector<8x32xf32>
    %121 = arith.addf %119, %120 : vector<8x32xf32>
    %122 = vector.broadcast %14 : vector<8x1xf32> to vector<8x32xf32>
    %123 = arith.mulf %121, %122 : vector<8x32xf32>
    %c160 = arith.constant 160 : index
    %c0_47 = arith.constant 0 : index
    %124 = vector.load %arg4[%c160, %c0_47] : memref<352x128xf32, #tpu.memory_space<vmem>>, vector<32x64xf32>
    %cst_48 = arith.constant dense<0.000000e+00> : vector<8x64xf32>
    %125 = tpu.matmul %123, %124, %cst_48 {dimension_numbers = #tpu.dot_dimension_numbers<[1], [0], [0], [1], [0, 0, 1, 1], [], []>} : vector<8x32xf32>, vector<32x64xf32>, vector<8x64xf32> -> vector<8x64xf32>
    %c304 = arith.constant 304 : index
    %c0_49 = arith.constant 0 : index
    %126 = vector.load %arg4[%c304, %c0_49] : memref<352x128xf32, #tpu.memory_space<vmem>>, vector<1x64xf32>
    %127 = vector.broadcast %126 : vector<1x64xf32> to vector<8x64xf32>
    %128 = arith.addf %125, %127 : vector<8x64xf32>
    %cst_50 = arith.constant 0.000000e+00 : f32
    %129 = vector.broadcast %cst_50 : f32 to vector<8x64xf32>
    %130 = arith.maximumf %128, %129 : vector<8x64xf32>
    %c96_51 = arith.constant 96 : index
    %c0_52 = arith.constant 0 : index
    %131 = vector.load %arg4[%c96_51, %c0_52] : memref<352x128xf32, #tpu.memory_space<vmem>>, vector<64x32xf32>
    %cst_53 = arith.constant dense<0.000000e+00> : vector<8x32xf32>
    %132 = tpu.matmul %130, %131, %cst_53 {dimension_numbers = #tpu.dot_dimension_numbers<[1], [0], [0], [1], [0, 0, 1, 1], [], []>} : vector<8x64xf32>, vector<64x32xf32>, vector<8x32xf32> -> vector<8x32xf32>
    %c312_54 = arith.constant 312 : index
    %c96_55 = arith.constant 96 : index
    %133 = vector.load %arg4[%c312_54, %c96_55] : memref<352x128xf32, #tpu.memory_space<vmem>>, vector<1x32xf32>
    %134 = vector.broadcast %133 : vector<1x32xf32> to vector<8x32xf32>
    %135 = arith.addf %132, %134 : vector<8x32xf32>
    %136 = arith.addf %121, %135 : vector<8x32xf32>
    %c320_56 = arith.constant 320 : index
    %c0_57 = arith.constant 0 : index
    %137 = vector.load %arg4[%c320_56, %c0_57] : memref<352x128xf32, #tpu.memory_space<vmem>>, vector<1x32xf32>
    %c320_58 = arith.constant 320 : index
    %c32_59 = arith.constant 32 : index
    %138 = vector.load %arg4[%c320_58, %c32_59] : memref<352x128xf32, #tpu.memory_space<vmem>>, vector<1x32xf32>
    %cst_60 = arith.constant dense<0.000000e+00> : vector<8xf32>
    %139 = vector.multi_reduction <add>, %136, %cst_60 [1] : vector<8x32xf32> to vector<8xf32>
    %140 = vector.shape_cast %139 : vector<8xf32> to vector<8x1xf32>
    %cst_61 = arith.constant 3.200000e+01 : f32
    %141 = vector.broadcast %cst_61 : f32 to vector<8x1xf32>
    %142 = arith.divf %140, %141 : vector<8x1xf32>
    %143 = vector.broadcast %142 : vector<8x1xf32> to vector<8x32xf32>
    %144 = arith.subf %136, %143 : vector<8x32xf32>
    %145 = arith.mulf %144, %144 : vector<8x32xf32>
    %cst_62 = arith.constant dense<0.000000e+00> : vector<8xf32>
    %146 = vector.multi_reduction <add>, %145, %cst_62 [1] : vector<8x32xf32> to vector<8xf32>
    %147 = vector.shape_cast %146 : vector<8xf32> to vector<8x1xf32>
    %cst_63 = arith.constant 3.200000e+01 : f32
    %148 = vector.broadcast %cst_63 : f32 to vector<8x1xf32>
    %149 = arith.divf %147, %148 : vector<8x1xf32>
    %cst_64 = arith.constant 9.99999974E-6 : f32
    %150 = vector.broadcast %cst_64 : f32 to vector<8x1xf32>
    %151 = arith.addf %149, %150 : vector<8x1xf32>
    %152 = math.rsqrt %151 : vector<8x1xf32>
    %153 = vector.broadcast %152 : vector<8x1xf32> to vector<8x32xf32>
    %154 = arith.mulf %144, %153 : vector<8x32xf32>
    %155 = vector.broadcast %137 : vector<1x32xf32> to vector<8x32xf32>
    %156 = arith.mulf %154, %155 : vector<8x32xf32>
    %157 = vector.broadcast %138 : vector<1x32xf32> to vector<8x32xf32>
    %158 = arith.addf %156, %157 : vector<8x32xf32>
    %159 = vector.broadcast %14 : vector<8x1xf32> to vector<8x32xf32>
    %160 = arith.mulf %158, %159 : vector<8x32xf32>
    %cst_65 = arith.constant dense<0.000000e+00> : vector<16x32xf32>
    %161 = tpu.matmul %4, %160, %cst_65 {dimension_numbers = #tpu.dot_dimension_numbers<[1], [0], [0], [1], [0, 0, 1, 1], [], []>} : vector<16x8xf32>, vector<8x32xf32>, vector<16x32xf32> -> vector<16x32xf32>
    %c160_66 = arith.constant 160 : index
    %c64_67 = arith.constant 64 : index
    %162 = vector.load %arg4[%c160_66, %c64_67] : memref<352x128xf32, #tpu.memory_space<vmem>>, vector<32x64xf32>
    %cst_68 = arith.constant dense<0.000000e+00> : vector<1x64xf32>
    %163 = tpu.matmul %34, %162, %cst_68 {dimension_numbers = #tpu.dot_dimension_numbers<[1], [0], [0], [1], [0, 0, 1, 1], [], []>} : vector<1x32xf32>, vector<32x64xf32>, vector<1x64xf32> -> vector<1x64xf32>
    %c304_69 = arith.constant 304 : index
    %c64_70 = arith.constant 64 : index
    %164 = vector.load %arg4[%c304_69, %c64_70] : memref<352x128xf32, #tpu.memory_space<vmem>>, vector<1x64xf32>
    %165 = arith.addf %163, %164 : vector<1x64xf32>
    %166 = tpu.iota {dimensions = array<i32: 0>} : vector<16x1xi32>
    %cst_71 = arith.constant 0.000000e+00 : f32
    %167 = vector.broadcast %cst_71 : f32 to vector<16x32xf32>
    %168 = vector.extract_strided_slice %165 {offsets = [0, 0], sizes = [1, 32], strides = [1, 1]} : vector<1x64xf32> to vector<1x32xf32>
    %169 = vector.broadcast %168 : vector<1x32xf32> to vector<16x32xf32>
    %170 = arith.addf %43, %169 : vector<16x32xf32>
    %c1_i32 = arith.constant 1 : i32
    %171 = vector.broadcast %c1_i32 : i32 to vector<16x1xi32>
    %172 = arith.cmpi sge, %166, %171 : vector<16x1xi32>
    %c1_i32_72 = arith.constant 1 : i32
    %173 = tpu.dynamic_rotate %170 by %c1_i32_72 dim 0 : vector<16x32xf32>, i32 -> vector<16x32xf32>
    %cst_73 = arith.constant 0.000000e+00 : f32
    %174 = vector.shape_cast %172 : vector<16x1xi1> to vector<16x1xi1>
    %175 = vector.broadcast %174 : vector<16x1xi1> to vector<16x32xi1>
    %176 = vector.broadcast %cst_73 : f32 to vector<16x32xf32>
    %177 = arith.select %175, %173, %176 : vector<16x32xi1>, vector<16x32xf32>
    %c15_i32 = arith.constant 15 : i32
    %178 = vector.broadcast %c15_i32 : i32 to vector<16x1xi32>
    %179 = arith.cmpi slt, %166, %178 : vector<16x1xi32>
    %c15_i32_74 = arith.constant 15 : i32
    %180 = tpu.dynamic_rotate %170 by %c15_i32_74 dim 0 : vector<16x32xf32>, i32 -> vector<16x32xf32>
    %cst_75 = arith.constant 0.000000e+00 : f32
    %181 = vector.shape_cast %179 : vector<16x1xi1> to vector<16x1xi1>
    %182 = vector.broadcast %181 : vector<16x1xi1> to vector<16x32xi1>
    %183 = vector.broadcast %cst_75 : f32 to vector<16x32xf32>
    %184 = arith.select %182, %180, %183 : vector<16x32xi1>, vector<16x32xf32>
    %185 = tpu.concatenate %177, %170, %184 in 1 : vector<16x32xf32>, vector<16x32xf32>, vector<16x32xf32> -> vector<16x96xf32>
    %c0_76 = arith.constant 0 : index
    %c0_77 = arith.constant 0 : index
    %186 = vector.load %arg4[%c0_76, %c0_77] : memref<352x128xf32, #tpu.memory_space<vmem>>, vector<96x32xf32>
    %cst_78 = arith.constant dense<0.000000e+00> : vector<16x32xf32>
    %187 = tpu.matmul %185, %186, %cst_78 {dimension_numbers = #tpu.dot_dimension_numbers<[1], [0], [0], [1], [0, 0, 1, 1], [], []>} : vector<16x96xf32>, vector<96x32xf32>, vector<16x32xf32> -> vector<16x32xf32>
    %c328 = arith.constant 328 : index
    %c72 = arith.constant 72 : index
    %188 = vector.load %arg4[%c328, %c72] : memref<352x128xf32, #tpu.memory_space<vmem>>, vector<1x32xf32>
    %189 = vector.broadcast %188 : vector<1x32xf32> to vector<16x32xf32>
    %190 = arith.addf %187, %189 : vector<16x32xf32>
    %c192_79 = arith.constant 192 : index
    %c64_80 = arith.constant 64 : index
    %191 = vector.load %arg4[%c192_79, %c64_80] : memref<352x128xf32, #tpu.memory_space<vmem>>, vector<32x32xf32>
    %cst_81 = arith.constant dense<0.000000e+00> : vector<16x32xf32>
    %192 = tpu.matmul %161, %191, %cst_81 {dimension_numbers = #tpu.dot_dimension_numbers<[1], [0], [0], [1], [0, 0, 1, 1], [], []>} : vector<16x32xf32>, vector<32x32xf32>, vector<16x32xf32> -> vector<16x32xf32>
    %193 = arith.addf %190, %192 : vector<16x32xf32>
    %c256_82 = arith.constant 256 : index
    %c96_83 = arith.constant 96 : index
    %194 = vector.load %arg4[%c256_82, %c96_83] : memref<352x128xf32, #tpu.memory_space<vmem>>, vector<4x32xf32>
    %cst_84 = arith.constant dense<0.000000e+00> : vector<1x32xf32>
    %195 = tpu.matmul %8, %194, %cst_84 {dimension_numbers = #tpu.dot_dimension_numbers<[1], [0], [0], [1], [0, 0, 1, 1], [], []>} : vector<1x4xf32>, vector<4x32xf32>, vector<1x32xf32> -> vector<1x32xf32>
    %196 = vector.broadcast %195 : vector<1x32xf32> to vector<16x32xf32>
    %197 = arith.addf %193, %196 : vector<16x32xf32>
    %c0_85 = arith.constant 0 : index
    %c32_86 = arith.constant 32 : index
    %198 = vector.load %arg4[%c0_85, %c32_86] : memref<352x128xf32, #tpu.memory_space<vmem>>, vector<96x32xf32>
    %cst_87 = arith.constant dense<0.000000e+00> : vector<16x32xf32>
    %199 = tpu.matmul %185, %198, %cst_87 {dimension_numbers = #tpu.dot_dimension_numbers<[1], [0], [0], [1], [0, 0, 1, 1], [], []>} : vector<16x96xf32>, vector<96x32xf32>, vector<16x32xf32> -> vector<16x32xf32>
    %c336 = arith.constant 336 : index
    %c0_88 = arith.constant 0 : index
    %200 = vector.load %arg4[%c336, %c0_88] : memref<352x128xf32, #tpu.memory_space<vmem>>, vector<1x32xf32>
    %201 = vector.broadcast %200 : vector<1x32xf32> to vector<16x32xf32>
    %202 = arith.addf %199, %201 : vector<16x32xf32>
    %c192_89 = arith.constant 192 : index
    %c96_90 = arith.constant 96 : index
    %203 = vector.load %arg4[%c192_89, %c96_90] : memref<352x128xf32, #tpu.memory_space<vmem>>, vector<32x32xf32>
    %cst_91 = arith.constant dense<0.000000e+00> : vector<16x32xf32>
    %204 = tpu.matmul %161, %203, %cst_91 {dimension_numbers = #tpu.dot_dimension_numbers<[1], [0], [0], [1], [0, 0, 1, 1], [], []>} : vector<16x32xf32>, vector<32x32xf32>, vector<16x32xf32> -> vector<16x32xf32>
    %205 = arith.addf %202, %204 : vector<16x32xf32>
    %c288_92 = arith.constant 288 : index
    %c0_93 = arith.constant 0 : index
    %206 = vector.load %arg4[%c288_92, %c0_93] : memref<352x128xf32, #tpu.memory_space<vmem>>, vector<4x32xf32>
    %cst_94 = arith.constant dense<0.000000e+00> : vector<1x32xf32>
    %207 = tpu.matmul %8, %206, %cst_94 {dimension_numbers = #tpu.dot_dimension_numbers<[1], [0], [0], [1], [0, 0, 1, 1], [], []>} : vector<1x4xf32>, vector<4x32xf32>, vector<1x32xf32> -> vector<1x32xf32>
    %208 = vector.broadcast %207 : vector<1x32xf32> to vector<16x32xf32>
    %209 = arith.addf %205, %208 : vector<16x32xf32>
    %210 = math.tanh %197 : vector<16x32xf32>
    %211 = arith.negf %209 : vector<16x32xf32>
    %212 = math.exp %211 : vector<16x32xf32>
    %cst_95 = arith.constant 1.000000e+00 : f32
    %213 = vector.broadcast %cst_95 : f32 to vector<16x32xf32>
    %214 = arith.addf %213, %212 : vector<16x32xf32>
    %215 = arith.divf %213, %214 : vector<16x32xf32>
    %216 = arith.mulf %210, %215 : vector<16x32xf32>
    %217 = vector.broadcast %3 : vector<16x1xf32> to vector<16x32xf32>
    %218 = arith.mulf %216, %217 : vector<16x32xf32>
    %c224 = arith.constant 224 : index
    %c64_96 = arith.constant 64 : index
    %219 = vector.load %arg4[%c224, %c64_96] : memref<352x128xf32, #tpu.memory_space<vmem>>, vector<32x32xf32>
    %cst_97 = arith.constant dense<0.000000e+00> : vector<16x32xf32>
    %220 = tpu.matmul %218, %219, %cst_97 {dimension_numbers = #tpu.dot_dimension_numbers<[1], [0], [0], [1], [0, 0, 1, 1], [], []>} : vector<16x32xf32>, vector<32x32xf32>, vector<16x32xf32> -> vector<16x32xf32>
    %c336_98 = arith.constant 336 : index
    %c96_99 = arith.constant 96 : index
    %221 = vector.load %arg4[%c336_98, %c96_99] : memref<352x128xf32, #tpu.memory_space<vmem>>, vector<1x32xf32>
    %222 = vector.broadcast %221 : vector<1x32xf32> to vector<16x32xf32>
    %223 = arith.addf %220, %222 : vector<16x32xf32>
    %224 = arith.addf %43, %223 : vector<16x32xf32>
    %225 = vector.broadcast %3 : vector<16x1xf32> to vector<16x32xf32>
    %226 = arith.mulf %224, %225 : vector<16x32xf32>
    %c224_100 = arith.constant 224 : index
    %c96_101 = arith.constant 96 : index
    %227 = vector.load %arg4[%c224_100, %c96_101] : memref<352x128xf32, #tpu.memory_space<vmem>>, vector<32x32xf32>
    %cst_102 = arith.constant dense<0.000000e+00> : vector<16x32xf32>
    %228 = tpu.matmul %218, %227, %cst_102 {dimension_numbers = #tpu.dot_dimension_numbers<[1], [0], [0], [1], [0, 0, 1, 1], [], []>} : vector<16x32xf32>, vector<32x32xf32>, vector<16x32xf32> -> vector<16x32xf32>
    %c344 = arith.constant 344 : index
    %c0_103 = arith.constant 0 : index
    %229 = vector.load %arg4[%c344, %c0_103] : memref<352x128xf32, #tpu.memory_space<vmem>>, vector<1x32xf32>
    %230 = vector.broadcast %229 : vector<1x32xf32> to vector<16x32xf32>
    %231 = arith.addf %228, %230 : vector<16x32xf32>
    %232 = arith.addf %167, %231 : vector<16x32xf32>
    %233 = vector.extract_strided_slice %165 {offsets = [0, 32], sizes = [1, 32], strides = [1, 1]} : vector<1x64xf32> to vector<1x32xf32>
    %234 = vector.broadcast %233 : vector<1x32xf32> to vector<16x32xf32>
    %235 = arith.addf %226, %234 : vector<16x32xf32>
    %c2_i32 = arith.constant 2 : i32
    %236 = vector.broadcast %c2_i32 : i32 to vector<16x1xi32>
    %237 = arith.cmpi sge, %166, %236 : vector<16x1xi32>
    %c2_i32_104 = arith.constant 2 : i32
    %238 = tpu.dynamic_rotate %235 by %c2_i32_104 dim 0 : vector<16x32xf32>, i32 -> vector<16x32xf32>
    %cst_105 = arith.constant 0.000000e+00 : f32
    %239 = vector.shape_cast %237 : vector<16x1xi1> to vector<16x1xi1>
    %240 = vector.broadcast %239 : vector<16x1xi1> to vector<16x32xi1>
    %241 = vector.broadcast %cst_105 : f32 to vector<16x32xf32>
    %242 = arith.select %240, %238, %241 : vector<16x32xi1>, vector<16x32xf32>
    %c14_i32 = arith.constant 14 : i32
    %243 = vector.broadcast %c14_i32 : i32 to vector<16x1xi32>
    %244 = arith.cmpi slt, %166, %243 : vector<16x1xi32>
    %c14_i32_106 = arith.constant 14 : i32
    %245 = tpu.dynamic_rotate %235 by %c14_i32_106 dim 0 : vector<16x32xf32>, i32 -> vector<16x32xf32>
    %cst_107 = arith.constant 0.000000e+00 : f32
    %246 = vector.shape_cast %244 : vector<16x1xi1> to vector<16x1xi1>
    %247 = vector.broadcast %246 : vector<16x1xi1> to vector<16x32xi1>
    %248 = vector.broadcast %cst_107 : f32 to vector<16x32xf32>
    %249 = arith.select %247, %245, %248 : vector<16x32xi1>, vector<16x32xf32>
    %250 = tpu.concatenate %242, %235, %249 in 1 : vector<16x32xf32>, vector<16x32xf32>, vector<16x32xf32> -> vector<16x96xf32>
    %c0_108 = arith.constant 0 : index
    %c64_109 = arith.constant 64 : index
    %251 = vector.load %arg4[%c0_108, %c64_109] : memref<352x128xf32, #tpu.memory_space<vmem>>, vector<96x32xf32>
    %cst_110 = arith.constant dense<0.000000e+00> : vector<16x32xf32>
    %252 = tpu.matmul %250, %251, %cst_110 {dimension_numbers = #tpu.dot_dimension_numbers<[1], [0], [0], [1], [0, 0, 1, 1], [], []>} : vector<16x96xf32>, vector<96x32xf32>, vector<16x32xf32> -> vector<16x32xf32>
    %c336_111 = arith.constant 336 : index
    %c32_112 = arith.constant 32 : index
    %253 = vector.load %arg4[%c336_111, %c32_112] : memref<352x128xf32, #tpu.memory_space<vmem>>, vector<1x32xf32>
    %254 = vector.broadcast %253 : vector<1x32xf32> to vector<16x32xf32>
    %255 = arith.addf %252, %254 : vector<16x32xf32>
    %c224_113 = arith.constant 224 : index
    %c0_114 = arith.constant 0 : index
    %256 = vector.load %arg4[%c224_113, %c0_114] : memref<352x128xf32, #tpu.memory_space<vmem>>, vector<32x32xf32>
    %cst_115 = arith.constant dense<0.000000e+00> : vector<16x32xf32>
    %257 = tpu.matmul %161, %256, %cst_115 {dimension_numbers = #tpu.dot_dimension_numbers<[1], [0], [0], [1], [0, 0, 1, 1], [], []>} : vector<16x32xf32>, vector<32x32xf32>, vector<16x32xf32> -> vector<16x32xf32>
    %258 = arith.addf %255, %257 : vector<16x32xf32>
    %c288_116 = arith.constant 288 : index
    %c32_117 = arith.constant 32 : index
    %259 = vector.load %arg4[%c288_116, %c32_117] : memref<352x128xf32, #tpu.memory_space<vmem>>, vector<4x32xf32>
    %cst_118 = arith.constant dense<0.000000e+00> : vector<1x32xf32>
    %260 = tpu.matmul %8, %259, %cst_118 {dimension_numbers = #tpu.dot_dimension_numbers<[1], [0], [0], [1], [0, 0, 1, 1], [], []>} : vector<1x4xf32>, vector<4x32xf32>, vector<1x32xf32> -> vector<1x32xf32>
    %261 = vector.broadcast %260 : vector<1x32xf32> to vector<16x32xf32>
    %262 = arith.addf %258, %261 : vector<16x32xf32>
    %c0_119 = arith.constant 0 : index
    %c96_120 = arith.constant 96 : index
    %263 = vector.load %arg4[%c0_119, %c96_120] : memref<352x128xf32, #tpu.memory_space<vmem>>, vector<96x32xf32>
    %cst_121 = arith.constant dense<0.000000e+00> : vector<16x32xf32>
    %264 = tpu.matmul %250, %263, %cst_121 {dimension_numbers = #tpu.dot_dimension_numbers<[1], [0], [0], [1], [0, 0, 1, 1], [], []>} : vector<16x96xf32>, vector<96x32xf32>, vector<16x32xf32> -> vector<16x32xf32>
    %c336_122 = arith.constant 336 : index
    %c64_123 = arith.constant 64 : index
    %265 = vector.load %arg4[%c336_122, %c64_123] : memref<352x128xf32, #tpu.memory_space<vmem>>, vector<1x32xf32>
    %266 = vector.broadcast %265 : vector<1x32xf32> to vector<16x32xf32>
    %267 = arith.addf %264, %266 : vector<16x32xf32>
    %c224_124 = arith.constant 224 : index
    %c32_125 = arith.constant 32 : index
    %268 = vector.load %arg4[%c224_124, %c32_125] : memref<352x128xf32, #tpu.memory_space<vmem>>, vector<32x32xf32>
    %cst_126 = arith.constant dense<0.000000e+00> : vector<16x32xf32>
    %269 = tpu.matmul %161, %268, %cst_126 {dimension_numbers = #tpu.dot_dimension_numbers<[1], [0], [0], [1], [0, 0, 1, 1], [], []>} : vector<16x32xf32>, vector<32x32xf32>, vector<16x32xf32> -> vector<16x32xf32>
    %270 = arith.addf %267, %269 : vector<16x32xf32>
    %c288_127 = arith.constant 288 : index
    %c64_128 = arith.constant 64 : index
    %271 = vector.load %arg4[%c288_127, %c64_128] : memref<352x128xf32, #tpu.memory_space<vmem>>, vector<4x32xf32>
    %cst_129 = arith.constant dense<0.000000e+00> : vector<1x32xf32>
    %272 = tpu.matmul %8, %271, %cst_129 {dimension_numbers = #tpu.dot_dimension_numbers<[1], [0], [0], [1], [0, 0, 1, 1], [], []>} : vector<1x4xf32>, vector<4x32xf32>, vector<1x32xf32> -> vector<1x32xf32>
    %273 = vector.broadcast %272 : vector<1x32xf32> to vector<16x32xf32>
    %274 = arith.addf %270, %273 : vector<16x32xf32>
    %275 = math.tanh %262 : vector<16x32xf32>
    %276 = arith.negf %274 : vector<16x32xf32>
    %277 = math.exp %276 : vector<16x32xf32>
    %cst_130 = arith.constant 1.000000e+00 : f32
    %278 = vector.broadcast %cst_130 : f32 to vector<16x32xf32>
    %279 = arith.addf %278, %277 : vector<16x32xf32>
    %280 = arith.divf %278, %279 : vector<16x32xf32>
    %281 = arith.mulf %275, %280 : vector<16x32xf32>
    %282 = vector.broadcast %3 : vector<16x1xf32> to vector<16x32xf32>
    %283 = arith.mulf %281, %282 : vector<16x32xf32>
    %c256_131 = arith.constant 256 : index
    %c0_132 = arith.constant 0 : index
    %284 = vector.load %arg4[%c256_131, %c0_132] : memref<352x128xf32, #tpu.memory_space<vmem>>, vector<32x32xf32>
    %cst_133 = arith.constant dense<0.000000e+00> : vector<16x32xf32>
    %285 = tpu.matmul %283, %284, %cst_133 {dimension_numbers = #tpu.dot_dimension_numbers<[1], [0], [0], [1], [0, 0, 1, 1], [], []>} : vector<16x32xf32>, vector<32x32xf32>, vector<16x32xf32> -> vector<16x32xf32>
    %c344_134 = arith.constant 344 : index
    %c32_135 = arith.constant 32 : index
    %286 = vector.load %arg4[%c344_134, %c32_135] : memref<352x128xf32, #tpu.memory_space<vmem>>, vector<1x32xf32>
    %287 = vector.broadcast %286 : vector<1x32xf32> to vector<16x32xf32>
    %288 = arith.addf %285, %287 : vector<16x32xf32>
    %289 = arith.addf %232, %288 : vector<16x32xf32>
    %290 = vector.broadcast %3 : vector<16x1xf32> to vector<16x32xf32>
    %291 = arith.mulf %289, %290 : vector<16x32xf32>
    %c256_136 = arith.constant 256 : index
    %c32_137 = arith.constant 32 : index
    %292 = vector.load %arg4[%c256_136, %c32_137] : memref<352x128xf32, #tpu.memory_space<vmem>>, vector<32x32xf32>
    %cst_138 = arith.constant dense<0.000000e+00> : vector<16x32xf32>
    %293 = tpu.matmul %291, %292, %cst_138 {dimension_numbers = #tpu.dot_dimension_numbers<[1], [0], [0], [1], [0, 0, 1, 1], [], []>} : vector<16x32xf32>, vector<32x32xf32>, vector<16x32xf32> -> vector<16x32xf32>
    %c328_139 = arith.constant 328 : index
    %c0_140 = arith.constant 0 : index
    %294 = vector.load %arg4[%c328_139, %c0_140] : memref<352x128xf32, #tpu.memory_space<vmem>>, vector<1x32xf32>
    %295 = vector.broadcast %294 : vector<1x32xf32> to vector<16x32xf32>
    %296 = arith.addf %293, %295 : vector<16x32xf32>
    %cst_141 = arith.constant 0.000000e+00 : f32
    %297 = vector.broadcast %cst_141 : f32 to vector<16x32xf32>
    %298 = arith.maximumf %296, %297 : vector<16x32xf32>
    %299 = vector.broadcast %cst_141 : f32 to vector<16x32xf32>
    %300 = arith.subf %296, %299 : vector<16x32xf32>
    %301 = arith.cmpf one, %300, %300 : vector<16x32xf32>
    %302 = vector.broadcast %cst_141 : f32 to vector<16x32xf32>
    %303 = arith.addf %296, %302 : vector<16x32xf32>
    %304 = math.absf %300 : vector<16x32xf32>
    %cst_142 = arith.constant 0.000000e+00 : f32
    %305 = vector.broadcast %cst_142 : f32 to vector<16x32xf32>
    %306 = arith.subf %305, %304 : vector<16x32xf32>
    %307 = math.exp %306 : vector<16x32xf32>
    %308 = math.log1p %307 : vector<16x32xf32>
    %309 = arith.addf %298, %308 : vector<16x32xf32>
    %310 = arith.select %301, %303, %309 : vector<16x32xi1>, vector<16x32xf32>
    %311 = math.tanh %310 : vector<16x32xf32>
    %312 = arith.mulf %296, %311 : vector<16x32xf32>
    %c328_143 = arith.constant 328 : index
    %c32_144 = arith.constant 32 : index
    %313 = vector.load %arg4[%c328_143, %c32_144] : memref<352x128xf32, #tpu.memory_space<vmem>>, vector<1x32xf32>
    %cst_145 = arith.constant dense<0.000000e+00> : vector<1x16xf32>
    %314 = tpu.matmul %313, %312, %cst_145 {dimension_numbers = #tpu.dot_dimension_numbers<[1], [1], [0], [0], [0, 0, 1, 0], [], []>} : vector<1x32xf32>, vector<16x32xf32>, vector<1x16xf32> -> vector<1x16xf32>
    %c328_146 = arith.constant 328 : index
    %c64_147 = arith.constant 64 : index
    %315 = vector.load %arg4[%c328_146, %c64_147] : memref<352x128xf32, #tpu.memory_space<vmem>>, vector<1x1xf32>
    %316 = vector.broadcast %315 : vector<1x1xf32> to vector<1x16xf32>
    %317 = arith.addf %314, %316 : vector<1x16xf32>
    %318 = arith.mulf %317, %10 : vector<1x16xf32>
    %c0_148 = arith.constant 0 : index
    %c0_149 = arith.constant 0 : index
    %c0_150 = arith.constant 0 : index
    %319 = vector.load %arg5[%c0_148, %c0_149, %c0_150] : memref<1x1x16xf32, #tpu.memory_space<vmem>>, vector<1x1x16xf32>
    %320 = vector.shape_cast %319 : vector<1x1x16xf32> to vector<1x16xf32>
    %321 = vector.shape_cast %318 : vector<1x16xf32> to vector<1x1x16xf32>
    tpu.vector_store %arg5[%c0_148, %c0_149, %c0_150], %321 {strides = array<i32>} : memref<1x1x16xf32, #tpu.memory_space<vmem>>, vector<1x1x16xf32>,
    return
  }
  func.func @transform_0(%arg0: i32) -> (i32, i32, i32) {
    %c0_i32 = arith.constant 0 : i32
    %c0_i32_0 = arith.constant 0 : i32
    %c0_i32_1 = arith.constant 0 : i32
    return %arg0, %c0_i32, %c0_i32_0 : i32, i32, i32
  }
  func.func @transform_1(%arg0: i32) -> (i32, i32, i32) {
    %c0_i32 = arith.constant 0 : i32
    %c0_i32_0 = arith.constant 0 : i32
    %c0_i32_1 = arith.constant 0 : i32
    return %arg0, %c0_i32, %c0_i32_0 : i32, i32, i32
  }
  func.func @transform_2(%arg0: i32) -> (i32, i32, i32) {
    %c0_i32 = arith.constant 0 : i32
    %c0_i32_0 = arith.constant 0 : i32
    %c0_i32_1 = arith.constant 0 : i32
    return %arg0, %c0_i32, %c0_i32_0 : i32, i32, i32
  }
  func.func @transform_3(%arg0: i32) -> (i32, i32) {
    %c0_i32 = arith.constant 0 : i32
    %c0_i32_0 = arith.constant 0 : i32
    %c0_i32_1 = arith.constant 0 : i32
    return %c0_i32, %c0_i32_0 : i32, i32
  }
  func.func @transform_4(%arg0: i32) -> (i32, i32, i32) {
    %c0_i32 = arith.constant 0 : i32
    %c0_i32_0 = arith.constant 0 : i32
    %c0_i32_1 = arith.constant 0 : i32
    return %arg0, %c0_i32, %c0_i32_0 : i32, i32, i32
  }
}

</mosaic_0001>

<bundles_post_ra>
// kernel: flow_matching_forward.1
= control target key start
LH: loop header
LB: loop body
LE: loop exit
PB: predicated region body
PF: predicated region fallthrough
CT: control target
= control target key end

     0   :  { %9 = vsyncpa [#allocation3], 0  ;;  %s5197_s0 = inlined_call_operand.vmem [shape: f32[2,16,16], index: 0, kind: input, shape index: {}]   ;;  %s5198_s1 = inlined_call_operand.vmem [shape: f32[2,1,48], index: 1, kind: input, shape index: {}]   ;;  %s5199_s2 = inlined_call_operand.vmem [shape: f32[2,8,40], index: 2, kind: input, shape index: {}]   ;;  %s5200_s3 = inlined_call_operand.vmem [shape: f32[352,128], index: 3, kind: input, shape index: {}]   ;;  %s5201_s4 = inlined_call_operand.hbm [shape: f32[2,1,16], index: 4, kind: output, shape index: {}]  }
   0x1   :  { %11 = vsyncpa [#allocation3 + $0x1], 0  ;;  %s4510_s15 = smov 0   ;;  %s4512_s16 = smov 0  }
   0x2   :  { %s4514_s17 = smov 0   ;;  %s4516_s18 = smov 0  }
   0x3 LB: > { %s4531_s19 = sadd.s32 4294967295, %s4465_s18   ;;  %s3305_s20 = sadd.s32 4294967294, %s4465_s18   ;;  %s4465_s18 = sphi %s4516_s18, %s5207_s18   ;;  %s4461_s17 = sphi %s4514_s17, %s5206_s17   ;;  %s4457_s16 = sphi %s4512_s16, %s5205_s16   ;;  %s4453_s15 = sphi %s4510_s15, %s5204_s15  }
   0x4   : > { %s4535_s21 = sadd.s32 1, %s4465_s18   ;;  %s123_s22 = sadd.s32 1, %s4461_s17 }
   0x5   : > { %s120_s23 = ssub.s32 %s4465_s18, %s4535_s21  ;;  %p133_p0 = scmp.ne.s32.totalorder %s4461_s17, %s4457_s16 }
   0x6   : > { %p121_p1 = scmp.eq.s32.totalorder %s120_s23, 0  ;;  %p134_p2 = scmp.eq.s32.totalorder %s4531_s19, 1 }
   0x7   : > { %p139_p3 = scmp.ne.s32.totalorder %s4457_s16, %s4453_s15  ;;  %p140_p4 = scmp.eq.s32.totalorder %s3305_s20, 1 }
   0x8   : > { %s4546_s24 = scalar_select %p121_p1, %s4461_s17, %s123_s22  }
   0x9   : > { %p4548_p5 = por %p134_p2, %p133_p0  ;;  %p4552_p6 = por %p140_p4, %p139_p3 }
   0xa   : > { %p3308_p7 = scmp.ge.s32.totalorder %s4465_s18, 1  ;;  %p182_p8 = scmp.lt.s32.totalorder %s4465_s18, 3 }
   0xc   : > { %p183_p9 = pnand %p3308_p7, %p182_p8 }
   0xd   : > { %v4561_v0 = vld [vmem:[%s5200_s3 + $0x60] sm:$0xff] (!%p183_p9)  ;;  %v4566_v1 = vld [vmem:[%s5200_s3 + $0x68] sm:$0xff] (!%p183_p9)  ;;  %v4571_v2 = vld [vmem:[%s5200_s3 + $0x70] sm:$0xff] (!%p183_p9)  ;;  %v4467_v7 = vmov (!%p183_p9), 0.0|0.0   ;;  %vm4468_vm0 = vmmov (!%p183_p9), 0   ;;  %v4469_v9 = vmov (!%p183_p9), 0.0   ;;  %v455_v32 = vlaneseq (!%p183_p9) }
   0xe   : > { %186 = sbr.rel (%p183_p9) target bundleno = 5011 (0x1393), region = 36  ;;  %v4156_v3 = vpack.i.bf16 (!%p183_p9), %v4566_v1, %v4561_v0  ;;  %v4578_v4 = vld [vmem:[%s5200_s3 + $0x78] sm:$0xff] (!%p183_p9)  ;;  %v230_v5 = vld [vmem:[%s5200_s3 + $0x100] sm:$0xff] (!%p183_p9)  ;;  %v231_v6 = vld [vmem:[%s5200_s3 + $0x108] sm:$0xff] (!%p183_p9)  ;;  %3878 = vmatprep.subr.bf16.mxu0 (!%p183_p9), %v4467_v7  ;;  %3869 = vmatprep.subr.bf16.mxu1 (!%p183_p9), %v4467_v7  ;;  %s4470_s13 = smov (!%p183_p9), 96   ;;  %vm245_vm1 = vcmask (!%p183_p9), 130048  }
   0xf   : > { %v4166_v8 = vpack.i.bf16 (!%p183_p9), %v231_v6, %v230_v5  ;;  %3566 = vmatprep.mubr.msk.f32.mxu0 (!%p183_p9), %vm4468_vm0, %v4469_v9  ;;  %3544 = vmatprep.mubr.msk.f32.mxu1 (!%p183_p9), %vm4468_vm0, %v4469_v9  ;;  %v4161_v10 = vpack.i.bf16 (!%p183_p9), %v4578_v4, %v4571_v2  ;;  %s4471_s14 = smov (!%p183_p9), 64   ;;  %v232_v11 = vld [vmem:[%s5200_s3 + $0x120] sm:$0x1] (!%p183_p9)  ;;  %s4472_s23 = smov (!%p183_p9), 32   ;;  %vm335_vm2 = vcmask (!%p183_p9), 261120   ;;  %v4636_v27 = vld [vmem:[%s5200_s3 + $0xc8] sm:$0xff] (!%p183_p9) }
  0x10   : > { %4157 = vrot.lane.b32.xlu0 (!%p183_p9), %v4156_v3, %s4470_s13  ;;  %p214_p10 = scmp.lt.s32.totalorder (!%p183_p9), %s4531_s19, 1  ;;  %v4631_v26 = vld [vmem:[%s5200_s3 + $0xc0] sm:$0xff] (!%p183_p9)  ;;  %v4641_v28 = vld [vmem:[%s5200_s3 + $0xd0] sm:$0xff] (!%p183_p9)  ;;  %v4648_v30 = vld [vmem:[%s5200_s3 + $0xd8] sm:$0xff] (!%p183_p9)  ;;  %v4654_v33 = vshrl.u32 (!%p183_p9), %v455_v32, 7  ;;  %s4473_s6 = smov (!%p183_p9), 80  }
  0x11   : > { %4167 = vrot.lane.b32.xlu1 (!%p183_p9), %v4166_v8, %s4471_s14  ;;  %v3873_v29 = vpack.c.bf16 (!%p183_p9), %v4636_v27, %v4631_v26  ;;  %v3876_v31 = vpack.c.bf16 (!%p183_p9), %v4648_v30, %v4641_v28  ;;  %v4662_v35 = vld [vmem:[%s5200_s3 + $0x128] sm:$0x1] (!%p183_p9)  ;;  %s4474_s7 = smov (!%p183_p9), 112   ;;  %vm635_vm3 = vcmask (!%p183_p9), 64512   ;;  %s4476_s9 = smov (!%p183_p9), 48   ;;  %vm1112_vm4 = vcmask (!%p183_p9), 523264  }
  0x12   : > { %v4657_v34 = vsub.s32 (!%p183_p9), 0, %v4654_v33  ;;  %s4477_s10 = smov (!%p183_p9), 16   ;;  %s4479_s11 = smov (!%p183_p9), 120   ;;  %vm1417_vm5 = vcmp.lt.s32.totalorder (!%p183_p9), %v4654_v33, 7  ;;  %vm1404_vm6 = vcmp.lt.s32.totalorder (!%p183_p9), %v4654_v33, 1  ;;  %vm1655_vm7 = vcmask (!%p183_p9), 1043456  }
  0x13   : > { %vm1652_vm9 = vcmask (!%p183_p9), 31744   ;;  %vm1392_vm10 = vcmp.ge.s32.totalorder (!%p183_p9), %v4654_v33, 1  ;;  %vm1465_vm11 = vcmask (!%p183_p9), 785408   ;;  %vm2290_vm12 = vcmp.lt.s32.totalorder (!%p183_p9), %v4654_v33, 6 }
  0x14   : > { %4162 = vrot.lane.b32.xlu0 (!%p183_p9), %v4161_v10, %s4470_s13  ;;  %v458_v38 = vrot.slane (!%p183_p9), %v4662_v35, %v4657_v34  ;;  %vm2277_vm14 = vcmp.lt.s32.totalorder (!%p183_p9), %v4654_v33, 2  ;;  %vm2265_vm15 = vcmp.ge.s32.totalorder (!%p183_p9), %v4654_v33, 2 }
  0x15   : > { %242 = vrot.lane.b32.xlu1 %v232_v11, %s4472_s23  ;;  %s4603_s27 = scalar_select %p214_p10, %s4531_s19, 1 }
  0x17   : > { %s3311_s28 = sshll.u32 %s4603_s27, 3  ;;  %s221_s5 = scalar_lea.vmem %s5198_s1, %s4603_s27 }
  0x18   : > { %s225_s8 = scalar_lea.vmem %s5199_s2, %s3311_s28  ;;  %v4614_v23 = vld [vmem:[%s221_s5] sm:$0x1] }
  0x19   : > { %v4617_v25 = vld [vmem:[%s225_s8] sm:$0xff]  ;;  %v3317_v36 = vadd.f32 -1.0, %v4614_v23  ;;  %s4475_s8 = smov 104  }
  0x1b   : > { %v450_v42 = vmul.f32 1e+09, %v3317_v36 }
  0x1d   : > { %v630_v47 = vrot.slane %v450_v42, %v4657_v34 }
  0x82   : > { %v4158_v12 = vpop.permute.xlu0 %4157 }
  0x83   : > { %v4160_v13 = vunpack.i.h.bf16 %v4158_v12  ;;  %v4159_v14 = vunpack.i.l.bf16 %v4158_v12  ;;  %v4168_v15 = vpop.permute.xlu1 %4167 }
  0x84   : > { %v4170_v16 = vunpack.i.h.bf16 %v4168_v15  ;;  %v4169_v17 = vunpack.i.l.bf16 %v4168_v15 }
  0x85   : > { %v3879_v18 = vpack.c.bf16 %v4160_v13, %v4159_v14 }
  0x86   : > { %v4163_v19 = vpop.permute.xlu0 %4162  ;;  %v3870_v20 = vpack.c.bf16 %v4170_v16, %v4169_v17 }
  0x87   : > { %v4165_v21 = vunpack.i.h.bf16 %v4163_v19  ;;  %v4164_v22 = vunpack.i.l.bf16 %v4163_v19  ;;  %3880 = vmatpush3.bf16.msra.mxu0 %v3879_v18  ;;  %v243_v37 = vpop.permute.xlu1 %242 }
  0x88   : > { %3881 = vmatprep.subr.bf16.mxu0 %v4467_v7  ;;  %3871 = vmatpush3.bf16.msra.mxu1 %v3870_v20 }
  0x89   : > { %v3882_v24 = vpack.c.bf16 %v4165_v21, %v4164_v22  ;;  %3872 = vmatprep.subr.bf16.mxu1 %v4467_v7  ;;  %v4701_v21 = vpack.i.bf16 %v4636_v27, %v4631_v26  ;;  %v4707_v22 = vpack.i.bf16 %v4648_v30, %v4641_v28 }
  0x8b   : > { %3883 = vmatpush3.bf16.msra.mxu0 %v3882_v24  ;;  %3545 = vmatmul.mubr.msk.f32.vlgmr.msra.gmra.mrb[0].mxu1 %vm245_vm1, %v4614_v23 }
  0x8c   : > { %3555 = vmatprep.mubr.msk.f32.mxu1 %vm4468_vm0, %v4469_v9  ;;  %3574 = vmatprep.subr.mxu0 %v4469_v9 }
  0x8d   : > { %3874 = vmatpush3.bf16.msra.mxu1 %v3873_v29 }
  0x8e   : > { %3567 = vmatmul.mubr.msk.f32.vlgmr.msra.gmra.mrb[0].mxu0 %vm335_vm2, %v4617_v25  ;;  %3875 = vmatprep.subr.bf16.mxu1 %v4467_v7 }
  0x8f   : > { %3576 = vmatprep.mubr.msk.f32.mxu0 %vm4468_vm0, %v4469_v9 }
  0x91   : > { %3877 = vmatpush3.bf16.msra.mxu1 %v3876_v31 }
  0x92   : > { %3569 = vmatprep.subr.mxu1 %v4469_v9 }
 0x15e   : > { %v315_v39 = vpop.f32.mrb[0].mxu1 }
 0x15f   : > { %v316_v40 = vadd.f32 %v315_v39, %v243_v37  ;;  %v3546_v41 = vpop.f32.mrb[1].mxu1 }
 0x161   : > { %v544_v43 = vpop.f32.mrb[0].mxu0  ;;  %v3313_v44 = vmul.f32 -1.442695, %v316_v40 }
 0x162   : > { %v4667_v45 = vadd.f32 %v544_v43, %v458_v38  ;;  %v3568_v46 = vpop.f32.mrb[1].mxu0 }
 0x163   : > { %4347 = vpow2.f32 %v3313_v44 }
 0x164   : > { %725 = vrot.lane.b32.xlu1 %v4667_v45, %s4473_s6  ;;  %549 = vrot.lane.b32.xlu0 %v4667_v45, %s4470_s13  ;;  %s3376_s6 = sshll.u32 %s4603_s27, 4 }
 0x168   : > { %723 = vrot.lane.b32.xlu0 %v4667_v45, %s4474_s7  ;;  %631 = vrot.lane.b32.xlu1 %v630_v47, %s4475_s8 }
 0x16d   : > { %v4348_v48 = vpop.eup %4347 }
 0x16e   : > { %v322_v49 = vadd.f32 1.0, %v4348_v48 }
 0x170   : > { %4349 = vrcp.f32 %v322_v49  ;;  %v3325_v49 = vld [vmem:[%s5200_s3 + $0x138] ss:$0 sm:$0xff] }
 0x17a   : > { %v4350_v50 = vpop.eup %4349 }
 0x17b   : > { %v325_v51 = vmul.f32 %v4350_v50, %v316_v40 }
 0x17d   : > { %3556 = vmatmul.mubr.msk.f32.vlgmr.msra.gmra.mrb[2].mxu1 %vm335_vm2, %v325_v51 }
 0x17e   : > { %3571 = vmatprep.mubr.msk.f32.mxu1 %vm4468_vm0, %v4469_v9 }
 0x1d6   : > { %v550_v52 = vpop.permute.xlu0 %549  ;;  %v726_v53 = vpop.permute.xlu1 %725 }
 0x1d7   : > { %3570 = vmatpush3.xpose.msk.msra.mxu1 %vm245_vm1, %v550_v52 }
 0x1d8   : > { %3579 = vmatprep.subr.mxu1 %v4469_v9 }
 0x1da   : > { %3572 = vmatmul.mubr.msk.f32.vlgmr.msra.gmra.mrb[4].mxu1 %vm245_vm1, %v4667_v45  ;;  %v724_v54 = vpop.permute.xlu0 %723  ;;  %v632_v58 = vpop.permute.xlu1 %631 }
 0x1db   : > { %3580 = vmatpush3.xpose.msk.msra.mxu1 %vm245_vm1, %v726_v53  ;;  %3581 = vmatprep.mubr.msk.f32.mxu1 %vm4468_vm0, %v4469_v9 }
 0x1dc   : > { %3884 = vmatprep.subr.bf16.mxu1 %v4467_v7 }
 0x1de   : > { %3582 = vmatmul.mubr.msk.f32.vlgmr.msra.gmra.mrb[6].mxu1 %vm245_vm1, %v724_v54 }
 0x1df   : > { %3597 = vmatprep.mubr.msk.f32.mxu1 %vm4468_vm0, %v4469_v9 }
 0x250   : > { %v4689_v55 = vpop.f32.mrb[2].mxu1 }
 0x251   : > { %v3557_v56 = vpop.f32.mrb[3].mxu1 }
 0x252   : > { %v4478_v56 = vmov 32  }
 0x253   : > { %4181 = vset.pattern.permute.xlu0 %v4478_v56 }
 0x2ad   : > { %v621_v57 = vpop.f32.mrb[4].mxu1 }
 0x2ae   : > { %v625_v59 = vmul.f32 0.25, %v621_v57  ;;  %v3573_v60 = vpop.f32.mrb[5].mxu1 }
 0x2b0   : > { %v634_v61 = vadd.f32 %v632_v58, %v625_v59 }
 0x2b1   : > { %v797_v62 = vpop.f32.mrb[6].mxu1 }
 0x2b2   : > { %v801_v63 = vmul.f32 0.25, %v797_v62  ;;  %v3583_v3 = vpop.f32.mrb[7].mxu1  ;;  %v636_v5 = vsel %vm635_vm3, %v634_v61, -inf  ;;  %v1018_v62 = vld [vmem:[%s5200_s3 + $0xa0] sm:$0xff] }
 0x2b3   : > { %637 = vmax.xlane.f32.xlu0 %v636_v5  ;;  %v1020_v5 = vld [vmem:[%s5200_s3 + $0xb0] sm:$0xff] }
 0x2b4   : > { %v802_v6 = vadd.f32 %v801_v63, %v632_v58  ;;  %v1019_v63 = vld [vmem:[%s5200_s3 + $0xa8] sm:$0xff] }
 0x2b5   : > { %v3891_v3 = vpack.c.bf16 %v1019_v63, %v1018_v62 }
 0x2b6   : > { %v803_v8 = vsel %vm635_vm3, %v802_v6, -inf }
 0x2b7   : > { %804 = vmax.xlane.f32.xlu1 %v803_v8  ;;  %v3897_v8 = vpack.c.bf16 %v4566_v1, %v4561_v0 }
 0x2c8   : > { %647 = vrot.lane.b32.xlu1 %v4667_v45, %s4471_s14 }
 0x2cc   : > { %4172 = vrot.lane.b32.xlu1 %v4701_v21, %s4470_s13 }
 0x2d0   : > { %4177 = vrot.lane.b32.xlu1 %v4707_v22, %s4470_s13 }
 0x340   : > { %v638_v10 = vpop.xlane.xlu0 %637 }
 0x341   : > { %v639_v11 = vsub.f32 %v634_v61, %v638_v10  ;;  %v3900_v10 = vpack.c.bf16 %v4578_v4, %v4571_v2 }
 0x343   : > { %v640_v12 = vmul.f32 1.442695, %v639_v11  ;;  %v1105_v11 = vld [vmem:[%s5200_s3 + $0x80] sm:$0xff] }
 0x344   : > { %v805_v13 = vpop.xlane.xlu1 %804 }
 0x345   : > { %4351 = vpow2.f32 %v640_v12  ;;  %v806_v14 = vsub.f32 %v802_v6, %v805_v13  ;;  %v1106_v12 = vld [vmem:[%s5200_s3 + $0x88] sm:$0xff] }
 0x346   : > { %v3903_v13 = vpack.c.bf16 %v1106_v12, %v1105_v11 }
 0x347   : > { %v807_v15 = vmul.f32 1.442695, %v806_v14 }
 0x348   : > { %v648_v16 = vpop.permute.xlu1 %647 }
 0x349   : > { %4353 = vpow2.f32 %v807_v15  ;;  %3575 = vmatpush3.msra.mxu0 %v648_v16 }
 0x34a   : > { %3584 = vmatprep.subr.mxu0 %v4469_v9 }
 0x34c   : > { %v4173_v28 = vpop.permute.xlu1 %4172 }
 0x34d   : > { %v4175_v30 = vunpack.i.h.bf16 %v4173_v28  ;;  %v4174_v37 = vunpack.i.l.bf16 %v4173_v28 }
 0x34f   : > { %v4352_v17 = vpop.eup %4351  ;;  %v3885_v38 = vpack.c.bf16 %v4175_v30, %v4174_v37 }
 0x350   : > { %v642_v18 = vsel %vm635_vm3, %v4352_v17, 0.0  ;;  %v4178_v39 = vpop.permute.xlu1 %4177 }
 0x351   : > { %643 = vadd.xlane.f32.xlu0 %v642_v18  ;;  %v4180_v40 = vunpack.i.h.bf16 %v4178_v39  ;;  %v4179_v41 = vunpack.i.l.bf16 %v4178_v39  ;;  %3886 = vmatpush3.bf16.msra.mxu1 %v3885_v38 }
 0x352   : > { %3887 = vmatprep.subr.bf16.mxu1 %v4467_v7 }
 0x353   : > { %v4354_v19 = vpop.eup %4353  ;;  %v3888_v42 = vpack.c.bf16 %v4180_v40, %v4179_v41 }
 0x354   : > { %v809_v20 = vsel %vm635_vm3, %v4354_v19, 0.0 }
 0x355   : > { %810 = vadd.xlane.f32.xlu0 %v809_v20  ;;  %3889 = vmatpush3.bf16.msra.mxu1 %v3888_v42 }
 0x356   : > { %3896 = vmatprep.subr.bf16.mxu1 %v4467_v7 }
 0x36b   : > { %814 = vrot.lane.b32.xlu0 %v4667_v45, %s4476_s9  ;;  %s3373_s9 = sshll.u32 %s4531_s19, 4  ;;  %s4484_s19 = smov [#allocation2]  }
 0x36c   : > { %s5155_s12 = scalar_lea.hbm %s5201_s4, %s3373_s9  ;;  %s4407_s20 = sshll.u32 %s4484_s19, 4  ;;  %s4408_s20 = int_to_ptr.vmem [resolvable:$false] %s4407_s20 }
 0x36d   : > { %s4409_s22 = scalar_lea.vmem %s4408_s20, 32 }
 0x3de   : > { %v644_v24 = vpop.xlane.xlu0 %643 }
 0x3df   : > { %4355 = vrcp.f32 %v644_v24  ;;  %v1107_v24 = vld [vmem:[%s5200_s3 + $0x90] sm:$0xff] }
 0x3e2   : > { %v811_v29 = vpop.xlane.xlu0 %810 }
 0x3e3   : > { %4357 = vrcp.f32 %v811_v29  ;;  %v1108_v29 = vld [vmem:[%s5200_s3 + $0x98] sm:$0xff] }
 0x3e6   : > { %v815_v36 = vpop.permute.xlu0 %814 }
 0x3e9   : > { %v4356_v31 = vpop.eup %4355 }
 0x3ea   : > { %v646_v32 = vmul.f32 %v4356_v31, %v4352_v17  ;;  %v3906_v31 = vpack.c.bf16 %v1108_v29, %v1107_v24 }
 0x3ec   : > { %3577 = vmatmul.mubr.msk.f32.vlgmr.msra.gmra.mrb[2].mxu0 %vm635_vm3, %v646_v32  ;;  %v1022_v32 = vld [vmem:[%s5200_s3 + $0x130] sm:$0x1] }
 0x3ed   : > { %v4358_v26 = vpop.eup %4357  ;;  %3585 = vmatpush3.msra.mxu0 %v815_v36  ;;  %3586 = vmatprep.mubr.msk.f32.mxu0 %vm4468_vm0, %v4469_v9  ;;  %v1026_v36 = vrot.slane %v1022_v32, %v4657_v34 }
 0x3ee   : > { %v813_v27 = vmul.f32 %v4358_v26, %v4354_v19  ;;  %3890 = vmatprep.subr.bf16.mxu0 %v4467_v7 }
 0x3f0   : > { %3587 = vmatmul.mubr.msk.f32.vlgmr.msra.gmra.mrb[4].mxu0 %vm635_vm3, %v813_v27 }
 0x3f1   : > { %3608 = vmatprep.mubr.msk.f32.mxu0 %vm4468_vm0, %v4469_v9  ;;  %3892 = vmatpush3.bf16.msra.mxu0 %v3891_v3 }
 0x3f2   : > { %3893 = vmatprep.subr.bf16.mxu0 %v4467_v7 }
 0x4bf   : > { %v719_v43 = vpop.f32.mrb[2].mxu0 }
 0x4c0   : > { %v3578_v44 = vpop.f32.mrb[3].mxu0 }
 0x4c3   : > { %v886_v45 = vpop.f32.mrb[4].mxu0 }
 0x4c4   : > { %891 = vrot.lane.b32.xlu0 %v886_v45, %s4477_s10  ;;  %v3588_v46 = vpop.f32.mrb[5].mxu0  ;;  %s218_s10 = scalar_lea.vmem %s5197_s0, %s3376_s6 }
 0x4c5   : > { %v226_v44 = vld [vmem:[%s218_s10] sm:$0xff]  ;;  %v227_v45 = vld [vmem:[%s218_s10 + $0x8] sm:$0xff] }
 0x536   : > { %v892_v47 = vpop.permute.xlu0 %891 }
 0x537   : > { %v894_v48 = vsel %vm245_vm1, %v719_v43, %v892_v47  ;;  %v4182_v43 = vpack.i.bf16 %v1019_v63, %v1018_v62  ;;  %v4480_v47 = vmov 0  }
 0x538   : > { %3598 = vmatmul.mubr.msk.f32.vlgmr.msra.gmra.mrb[8].mxu1 %vm335_vm2, %v894_v48  ;;  %4193 = vset.pattern.permute.xlu1 %v4480_v47 }
 0x539   : > { %3627 = vmatprep.mubr.msk.f32.mxu1 %vm4468_vm0, %v4469_v9  ;;  %3898 = vmatpush3.bf16.msra.mxu1 %v3897_v8 }
 0x53a   : > { %3899 = vmatprep.subr.bf16.mxu1 %v4467_v7 }
 0x53d   : > { %3901 = vmatpush3.bf16.msra.mxu1 %v3900_v10 }
 0x53e   : > { %3902 = vmatprep.subr.bf16.mxu1 %v4467_v7 }
 0x541   : > { %3904 = vmatpush3.bf16.msra.mxu1 %v3903_v13 }
 0x542   : > { %3905 = vmatprep.subr.bf16.mxu1 %v4467_v7 }
 0x545   : > { %3907 = vmatpush3.bf16.msra.mxu1 %v3906_v31 }
 0x546   : > { %3684 = vmatprep.subr.mxu1 %v4469_v9 }
 0x60b   : > { %v985_v50 = vpop.f32.mrb[8].mxu1 }
 0x60c   : > { %v986_v51 = vadd.f32 %v3325_v49, %v985_v50  ;;  %v3599_v52 = vpop.f32.mrb[9].mxu1 }
 0x60e   : > { %v989_v53 = vadd.f32 %v986_v51, %v4617_v25 }
 0x610   : > { %v990_v54 = vsel %vm335_vm2, %v989_v53, 0.0 }
 0x611   : > { %991 = vadd.xlane.f32.xlu1 %v990_v54 }
 0x622   : > { %1005 = vrot.lane.b32.xlu1 %v3325_v49, %s4470_s13 }
 0x626   : > { %1009 = vrot.lane.b32.xlu1 %v3325_v49, %s4471_s14 }
 0x62a   : > { %1109 = vrot.lane.b32.xlu1 %v3325_v49, %s4472_s23 }
 0x69e   : > { %v992_v57 = vpop.xlane.xlu1 %991 }
 0x69f   : > { %v994_v58 = vmul.f32 0.03125, %v992_v57 }
 0x6a1   : > { %v995_v59 = vsub.f32 %v989_v53, %v994_v58  ;;  %v3316_v58 = vld [vmem:[%s5200_s3 + $0x140] ss:$0 sm:$0xff] }
 0x6a2   : > { %v1006_v4 = vpop.permute.xlu1 %1005 }
 0x6a3   : > { %v996_v60 = vmul.f32 %v995_v59, %v995_v59 }
 0x6a5   : > { %v997_v61 = vsel %vm335_vm2, %v996_v60, 0.0 }
 0x6a6   : > { %998 = vadd.xlane.f32.xlu0 %v997_v61  ;;  %v1010_v16 = vpop.permute.xlu1 %1009 }
 0x6aa   : > { %v1110_v37 = vpop.permute.xlu1 %1109 }
 0x6bc   : > { %1014 = vperm.xlu0 %4181, %v4617_v25   ;;  %v1021_v25 = vld [vmem:[%s5200_s3 + $0xb8] sm:$0xff] }
 0x6bd   : > { %v3894_v6 = vpack.c.bf16 %v1021_v25, %v1020_v5  ;;  %v4187_v46 = vpack.i.bf16 %v1021_v25, %v1020_v5 }
 0x6bf   : > { %3895 = vmatpush3.bf16.msra.mxu0 %v3894_v6 }
 0x6c0   : > { %4192 = vset.pattern.permute.xlu0 %v4480_v47  ;;  %v1642_v47 = vld [vmem:[%s5200_s3 + $0x100] sm:$0xf] }
 0x733   : > { %v999_v0 = vpop.xlane.xlu0 %998 }
 0x734   : > { %v1000_v1 = vmul.f32 0.03125, %v999_v0 }
 0x736   : > { %v1001_v2 = vadd.f32 1e-05, %v1000_v1 }
 0x738   : > { %4359 = vrsqrt.f32 %v1001_v2 }
 0x73b   : > { %v4760_v18 = vpop.permute.xlu0 %1014 }
 0x742   : > { %v4360_v14 = vpop.eup %4359 }
 0x743   : > { %v1003_v15 = vmul.f32 %v4360_v14, %v995_v59 }
 0x745   : > { %v1008_v17 = vmul.f32 %v1006_v4, %v1003_v15 }
 0x747   : > { %v1012_v19 = vadd.f32 %v1010_v16, %v1008_v17 }
 0x749   : > { %v1017_v20 = vmul.f32 %v4760_v18, %v1012_v19 }
 0x74b   : > { %3609 = vmatmul.mubr.msk.f32.vlgmr.msra.gmra.mrb[6].mxu0 %vm335_vm2, %v1017_v20 }
 0x81e   : > { %v1096_v26 = vpop.f32.mrb[6].mxu0 }
 0x81f   : > { %v1097_v27 = vadd.f32 %v1096_v26, %v1026_v36  ;;  %v3610_v28 = vpop.f32.mrb[7].mxu0 }
 0x821   : > { %v1100_v30 = vmax.f32 %v1097_v27, 0.0 }
 0x823   : > { %3628 = vmatmul.mubr.msk.f32.vlgmr.msra.gmra.mrb[10].mxu1 %vm1112_vm4, %v1100_v30 }
 0x824   : > { %3686 = vmatprep.mubr.msk.f32.mxu1 %vm4468_vm0, %v4469_v9 }
 0x8f6   : > { %v1182_v38 = vpop.f32.mrb[10].mxu1 }
 0x8f7   : > { %v1183_v39 = vadd.f32 %v1182_v38, %v1110_v37  ;;  %v3629_v40 = vpop.f32.mrb[11].mxu1 }
 0x8f9   : > { %v1186_v41 = vadd.f32 %v1183_v39, %v1012_v19 }
 0x8fb   : > { %v1187_v42 = vsel %vm335_vm2, %v1186_v41, 0.0 }
 0x8fc   : > { %1188 = vadd.xlane.f32.xlu1 %v1187_v42  ;;  %v1444_v42 = vld [vmem:[%s5200_s3] sm:$0xff] }
 0x90d   : > { %332 = vrot.lane.b32.xlu1 %v4662_v35, %s4472_s23  ;;  %v4481_v35 = vmov 1  }
 0x911   : > { %4183 = vrot.lane.b32.xlu1 %v4182_v43, %s4471_s14  ;;  %v1445_v43 = vld [vmem:[%s5200_s3 + $0x8] sm:$0xff] }
 0x915   : > { %1203 = vrot.lane.b32.xlu1 %v226_v44, %s4479_s11 }
 0x919   : > { %1205 = vrot.lane.b32.xlu1 %v227_v45, %s4479_s11 }
 0x91d   : > { %4188 = vrot.lane.b32.xlu1 %v4187_v46, %s4471_s14  ;;  %v4831_v46 = vpack.i.bf16 %v1445_v43, %v1444_v42 }
 0x921   : > { %1303 = vrot.lane.b32.xlu1 %v1022_v32, %s4471_s14 }
 0x925   : > { %424 = vperm.xlu1 %4193, %v227_v45  }
 0x929   : > { %4194 = vset.pattern.permute.xlu1 %v4481_v35 }
 0x92a   : > { %440 = vperm.xlu1 %4194, %v226_v44  }
 0x989   : > { %v1189_v48 = vpop.xlane.xlu1 %1188 }
 0x98a   : > { %v1190_v49 = vmul.f32 0.03125, %v1189_v48  ;;  %v1447_v48 = vld [vmem:[%s5200_s3 + $0x18] sm:$0xff] }
 0x98c   : > { %v1191_v50 = vsub.f32 %v1186_v41, %v1190_v49 }
 0x98d   : > { %v333_v51 = vpop.permute.xlu1 %332 }
 0x98e   : > { %v406_v52 = vadd.f32 %v4689_v55, %v333_v51  ;;  %v1192_v53 = vmul.f32 %v1191_v50, %v1191_v50  ;;  %v4852_v51 = vrot.slane %v4614_v23, %v4657_v34 }
 0x990   : > { %v1193_v54 = vsel %vm335_vm2, %v1192_v53, 0.0  ;;  %v3315_v59 = vmul.f32 -1.442695, %v406_v52  ;;  %v1448_v53 = vld [vmem:[%s5200_s3 + $0x20] sm:$0xff] }
 0x991   : > { %1194 = vadd.xlane.f32.xlu0 %v1193_v54  ;;  %v4184_v56 = vpop.permute.xlu1 %4183  ;;  %v1449_v54 = vld [vmem:[%s5200_s3 + $0x28] sm:$0xff] }
 0x992   : > { %4361 = vpow2.f32 %v3315_v59  ;;  %v4186_v11 = vunpack.i.h.bf16 %v4184_v56  ;;  %v4185_v12 = vunpack.i.l.bf16 %v4184_v56  ;;  %v4869_v23 = vpack.i.bf16 %v1449_v54, %v1448_v53 }
 0x993   : > { %v3914_v59 = vpack.c.bf16 %v1445_v43, %v1444_v42  ;;  %v4931_v42 = vld [vmem:[%s5200_s3 + $0xe8] sm:$0xff] }
 0x994   : > { %v3909_v4 = vpack.c.bf16 %v4186_v11, %v4185_v12  ;;  %v4905_v11 = vadd.s32 8, %v4654_v33 }
 0x995   : > { %v1204_v57 = vpop.permute.xlu1 %1203 }
 0x996   : > { %3632 = vmatprep.mubr.msk.f32.mxu0 %vm635_vm3, %v1204_v57  ;;  %v1452_v57 = vld [vmem:[%s5200_s3 + $0x40] sm:$0xff]  ;;  %vm1414_vm8 = vcmp.lt.s32.totalorder %v4905_v11, 15  ;;  %vm2287_vm13 = vcmp.lt.s32.totalorder %v4905_v11, 14 }
 0x999   : > { %v1206_v5 = vpop.permute.xlu1 %1205 }
 0x99c   : > { %v4362_v62 = vpop.eup %4361 }
 0x99d   : > { %v412_v3 = vadd.f32 1.0, %v4362_v62  ;;  %v4189_v13 = vpop.permute.xlu1 %4188  ;;  %v1455_v62 = vld [vmem:[%s5200_s3 + $0x58] sm:$0xff] }
 0x99e   : > { %v4191_v1 = vunpack.i.h.bf16 %v4189_v13  ;;  %v4190_v2 = vunpack.i.l.bf16 %v4189_v13 }
 0x9a0   : > { %v3912_v14 = vpack.c.bf16 %v4191_v1, %v4190_v2 }
 0x9a1   : > { %v1304_v19 = vpop.permute.xlu1 %1303 }
 0x9a5   : > { %v425_v36 = vpop.permute.xlu1 %424 }
 0x9a6   : > { %v432_v27 = vmul.f32 %v3316_v58, %v425_v36 }
 0x9a7   : > { %434 = vrot.lane.b32.xlu0 %v3316_v58, %s4470_s13 }
 0x9a9   : > { %v4813_v38 = vpop.permute.xlu1 %440 }
 0x9ab   : > { %419 = vperm.xlu0 %4192, %v226_v44  }
 0x9af   : > { %4195 = vset.pattern.permute.xlu0 %v4481_v35  ;;  %v1446_v35 = vld [vmem:[%s5200_s3 + $0x10] sm:$0xff] }
 0x9b0   : > { %444 = vperm.xlu0 %4195, %v227_v45   ;;  %v4843_v49 = vpack.i.bf16 %v1447_v48, %v1446_v35 }
 0xa1e   : > { %v1195_v60 = vpop.xlane.xlu0 %1194 }
 0xa1f   : > { %v1196_v55 = vmul.f32 0.03125, %v1195_v60  ;;  %v3918_v60 = vpack.c.bf16 %v1447_v48, %v1446_v35 }
 0xa21   : > { %v1197_v61 = vadd.f32 1e-05, %v1196_v55 }
 0xa22   : > { %v435_v8 = vpop.permute.xlu0 %434 }
 0xa23   : > { %4363 = vrsqrt.f32 %v1197_v61  ;;  %v438_v30 = vadd.f32 %v435_v8, %v432_v27  ;;  %v1454_v61 = vld [vmem:[%s5200_s3 + $0x50] sm:$0xff] }
 0xa24   : > { %4365 = vrcp.f32 %v412_v3  ;;  %v4893_v3 = vpack.i.bf16 %v1455_v62, %v1454_v61 }
 0xa2a   : > { %v420_v32 = vpop.permute.xlu0 %419 }
 0xa2b   : > { %v431_v26 = vmul.f32 %v3316_v58, %v420_v32 }
 0xa2d   : > { %v4364_v63 = vpop.eup %4363  ;;  %v437_v28 = vadd.f32 %v435_v8, %v431_v26 }
 0xa2e   : > { %v1199_v25 = vmul.f32 %v4364_v63, %v1191_v50  ;;  %v4366_v15 = vpop.eup %4365  ;;  %v1450_v50 = vld [vmem:[%s5200_s3 + $0x30] sm:$0xff]  ;;  %v3922_v63 = vpack.c.bf16 %v1449_v54, %v1448_v53 }
 0xa2f   : > { %v415_v16 = vmul.f32 %v4366_v15, %v406_v52  ;;  %v4811_v37 = vpop.permute.xlu0 %444  ;;  %v4816_v39 = vmul.f32 %v4813_v38, %v437_v28  ;;  %v1451_v52 = vld [vmem:[%s5200_s3 + $0x38] sm:$0xff]  ;;  %v4946_v53 = vld [vmem:[%s5200_s3 + $0xf0] sm:$0xff] }
 0xa30   : > { %v1200_v6 = vmul.f32 %v3316_v58, %v1199_v25  ;;  %v4819_v40 = vmul.f32 %v4811_v37, %v438_v30  ;;  %v4865_v56 = vpack.i.bf16 %v1451_v52, %v1450_v50  ;;  %v1453_v58 = vld [vmem:[%s5200_s3 + $0x48] sm:$0xff] }
 0xa31   : > { %v4881_v55 = vpack.i.bf16 %v1453_v58, %v1452_v57  ;;  %v3930_v25 = vpack.c.bf16 %v1453_v58, %v1452_v57  ;;  %v4921_v30 = vld [vmem:[%s5200_s3 + $0x148] sm:$0x1] }
 0xa32   : > { %v1201_v10 = vadd.f32 %v1200_v6, %v435_v8  ;;  %v3934_v6 = vpack.c.bf16 %v1455_v62, %v1454_v61 }
 0xa34   : > { %v1202_v0 = vmul.f32 %v1201_v10, %v4760_v18 }
 0xa36   : > { %3630 = vmatprep.subr.mxu0 %v1202_v0 }
 0xa37   : > { %3631 = vmatpush3.msra.mxu0 %v1202_v0 }
 0xa38   : > { %3633 = vmatmul.mubr.msk.f32.vlgmr.msra.gmra.mrb[8].mxu0 %vm635_vm3, %v1206_v5  ;;  %3908 = vmatprep.subr.bf16.mxu0 %v4467_v7  ;;  %v3926_v5 = vpack.c.bf16 %v1451_v52, %v1450_v50 }
 0xa39   : > { %3910 = vmatpush3.bf16.msra.mxu0 %v3909_v4  ;;  %3643 = vmatprep.mubr.msk.f32.mxu0 %vm4468_vm0, %v4469_v9 }
 0xa3a   : > { %3911 = vmatprep.subr.bf16.mxu0 %v4467_v7 }
 0xa3d   : > { %3913 = vmatpush3.bf16.msra.mxu0 %v3912_v14 }
 0xa3e   : > { %3915 = vmatprep.subr.bf16.mxu0 %v3914_v59 }
 0xa40   : > { %3644 = vmatmul.mubr.msk.f32.vlgmr.msra.gmra.mrb[10].mxu0 %vm335_vm2, %v415_v16 }
 0xa41   : > { %3917 = vmatpush3.bf16.msra.mxu0 %v3914_v59 }
 0xa42   : > { %3919 = vmatprep.subr.bf16.mxu0 %v3918_v60 }
 0xa45   : > { %3921 = vmatpush3.bf16.msra.mxu0 %v3918_v60 }
 0xa46   : > { %3923 = vmatprep.subr.bf16.mxu0 %v3922_v63 }
 0xa49   : > { %3925 = vmatpush3.bf16.msra.mxu0 %v3922_v63 }
 0xa4a   : > { %3927 = vmatprep.subr.bf16.mxu0 %v3926_v5 }
 0xa4d   : > { %3929 = vmatpush3.bf16.msra.mxu0 %v3926_v5 }
 0xa4e   : > { %3931 = vmatprep.subr.bf16.mxu0 %v3930_v25 }
 0xa51   : > { %3933 = vmatpush3.bf16.msra.mxu0 %v3930_v25 }
 0xa52   : > { %3935 = vmatprep.subr.bf16.mxu0 %v3934_v6 }
 0xa55   : > { %3937 = vmatpush3.bf16.msra.mxu0 %v3934_v6 }
 0xb0b   : > { %v4802_v17 = vpop.f32.mrb[8].mxu0 }
 0xb0c   : > { %v4804_v18 = vpop.f32.mrb[9].mxu0 }
 0xb13   : > { %v1375_v20 = vpop.f32.mrb[10].mxu0 }
 0xb14   : > { %v1376_v24 = vadd.f32 %v1375_v20, %v1304_v19  ;;  %v3645_v29 = vpop.f32.mrb[11].mxu0 }
 0xb16   : > { %v4807_v31 = vrot.slane %v1376_v24, %v4657_v34 }
 0xb18   : > { %1387 = vrot.lane.b32.xlu1 %v4807_v31, %s4471_s14 }
 0xb8a   : > { %v1388_v41 = vpop.permute.xlu1 %1387 }
 0xb8b   : > { %v1390_v44 = vadd.f32 %v1388_v41, %v4816_v39  ;;  %v1391_v45 = vadd.f32 %v1388_v41, %v4819_v40  ;;  %v4926_v41 = vld [vmem:[%s5200_s3 + $0xe0] sm:$0xff] }
 0xb8d   : > { %1398 = vrot.lane.b32.xlu0 %v1391_v45, %s4471_s14  ;;  %1396 = vrot.lane.b32.xlu1 %v1390_v44, %s4471_s14 }
 0xb91   : > { %1650 = vrot.lane.b32.xlu0 %v1642_v47, %s4472_s23  ;;  %4197 = vrot.lane.b32.xlu1 %v4831_v46, %s4470_s13  ;;  %v4941_v47 = vpack.i.bf16 %v4931_v42, %v4926_v41 }
 0xb95   : > { %4202 = vrot.lane.b32.xlu0 %v4843_v49, %s4470_s13  ;;  %1647 = vrot.lane.b32.xlu1 %v4852_v51, %s4474_s7  ;;  %s4482_s7 = smov 56  }
 0xb99   : > { %4212 = vrot.lane.b32.xlu0 %v4865_v56, %s4470_s13  ;;  %4207 = vrot.lane.b32.xlu1 %v4869_v23, %s4470_s13 }
 0xb9d   : > { %4227 = vrot.lane.b32.xlu0 %v4701_v21, %s4471_s14  ;;  %4217 = vrot.lane.b32.xlu1 %v4881_v55, %s4470_s13 }
 0xba1   : > { %1426 = vrot.lane.b32.xlu0 %v1390_v44, %s4470_s13  ;;  %4222 = vrot.lane.b32.xlu1 %v4893_v3, %s4470_s13 }
 0xba5   : > { %1428 = vrot.lane.b32.xlu0 %v1391_v45, %s4470_s13  ;;  %v4937_v45 = vrot.slane %v4921_v30, %v4657_v34 }
 0xba9   : > { %4232 = vrot.lane.b32.xlu0 %v4701_v21, %s4472_s23 }
 0xbad   : > { %4242 = vrot.lane.b32.xlu0 %v4707_v22, %s4472_s23 }
 0xbb1   : > { %4247 = vrot.lane.b32.xlu0 %v4941_v47, %s4471_s14 }
 0xbff   : > { %v1399_v8 = vpop.permute.xlu0 %1398  ;;  %v1397_v10 = vpop.permute.xlu1 %1396 }
 0xc00   : > { %v1403_v12 = vrot.slane %v1399_v8, 7  ;;  %v1416_v13 = vrot.slane %v1399_v8, 1  ;;  %v1402_v0 = vrot.slane %v1397_v10, 7  ;;  %v1415_v1 = vrot.slane %v1397_v10, 1 }
 0xc02   : > { %v1418_v21 = vsel %vm1417_vm5, %v1415_v1, %v1416_v13  ;;  %v1406_v2 = vsel %vm1404_vm6, %v1403_v12, %v1402_v0  ;;  %v4908_v4 = vsel %vm1404_vm6, %v1402_v0, %v1403_v12  ;;  %v1419_v15 = vsel %vm1417_vm5, %v1416_v13, %v1415_v1  ;;  %vm4076_vm5 = vmpackc.low %vm335_vm2, %vm335_vm2 }
 0xc03   : > { %v1651_v14 = vpop.permute.xlu0 %1650  ;;  %1434 = vrot.lane.b32.xlu1 %v1418_v21, %s4471_s14  ;;  %v4198_v16 = vpop.permute.xlu1 %4197  ;;  %v1425_v24 = vsel %vm1414_vm8, %v1419_v15, 0.0  ;;  %v1411_v10 = vsel %vm1392_vm10, %v1406_v2, 0.0  ;;  %vm3214_vm6 = vcmask 122880  }
 0xc04   : > { %v4200_v19 = vunpack.i.h.bf16 %v4198_v16  ;;  %v4199_v20 = vunpack.i.l.bf16 %v4198_v16  ;;  %3685 = vmatpush3.msk.msra.mxu1 %vm1655_vm7, %v1651_v14 }
 0xc06   : > { %v3946_v29 = vpack.c.bf16 %v4200_v19, %v4199_v20 }
 0xc07   : > { %v4203_v32 = vpop.permute.xlu0 %4202  ;;  %1436 = vrot.lane.b32.xlu1 %v1425_v24, %s4471_s14  ;;  %v4914_v36 = vpop.permute.xlu1 %1647  ;;  %v4969_v24 = vld [vmem:[%s5200_s3 + $0x150] ss:$0 sm:$0xff] }
 0xc08   : > { %v4205_v26 = vunpack.i.h.bf16 %v4203_v32  ;;  %v4204_v27 = vunpack.i.l.bf16 %v4203_v32  ;;  %3947 = vmatprep.subr.bf16.mxu1 %v3946_v29  ;;  %3687 = vmatmul.mubr.msk.f32.vlgmr.msra.gmra.mrb[12].mxu1 %vm1652_vm9, %v4914_v36 }
 0xc09   : > { %3949 = vmatpush3.bf16.msra.mxu1 %v3946_v29  ;;  %2070 = vrot.lane.b32.xlu0 %v4969_v24, %s4472_s23 }
 0xc0a   : > { %v3950_v28 = vpack.c.bf16 %v4205_v26, %v4204_v27 }
 0xc0b   : > { %v4213_v43 = vpop.permute.xlu0 %4212  ;;  %4237 = vrot.lane.b32.xlu1 %v4707_v22, %s4471_s14  ;;  %v4208_v44 = vpop.permute.xlu1 %4207  ;;  %v4951_v22 = vld [vmem:[%s5200_s3 + $0xf8] sm:$0xff] }
 0xc0c   : > { %v4215_v35 = vunpack.i.h.bf16 %v4213_v43  ;;  %v4214_v48 = vunpack.i.l.bf16 %v4213_v43  ;;  %v4210_v50 = vunpack.i.h.bf16 %v4208_v44  ;;  %v4209_v52 = vunpack.i.l.bf16 %v4208_v44  ;;  %3951 = vmatprep.subr.bf16.mxu1 %v3950_v28 }
 0xc0d   : > { %3953 = vmatpush3.bf16.msra.mxu1 %v3950_v28  ;;  %v4959_v60 = vpack.i.bf16 %v4951_v22, %v4946_v53 }
 0xc0e   : > { %v3958_v54 = vpack.c.bf16 %v4215_v35, %v4214_v48  ;;  %v3954_v57 = vpack.c.bf16 %v4210_v50, %v4209_v52 }
 0xc0f   : > { %v4228_v58 = vpop.permute.xlu0 %4227  ;;  %v4218_v59 = vpop.permute.xlu1 %4217  ;;  %1462 = vrot.lane.b32.xlu1 %v4937_v45, %s4482_s7 }
 0xc10   : > { %v4230_v61 = vunpack.i.h.bf16 %v4228_v58  ;;  %v4229_v62 = vunpack.i.l.bf16 %v4228_v58  ;;  %3955 = vmatprep.subr.bf16.mxu1 %v3954_v57  ;;  %v4220_v63 = vunpack.i.h.bf16 %v4218_v59  ;;  %v4219_v5 = vunpack.i.l.bf16 %v4218_v59 }
 0xc11   : > { %3957 = vmatpush3.bf16.msra.mxu1 %v3954_v57 }
 0xc12   : > { %v3938_v25 = vpack.c.bf16 %v4230_v61, %v4229_v62  ;;  %v3962_v6 = vpack.c.bf16 %v4220_v63, %v4219_v5  ;;  %3959 = vmatprep.subr.bf16.mxu1 %v3958_v54 }
 0xc13   : > { %v1427_v8 = vpop.permute.xlu0 %1426  ;;  %v4223_v12 = vpop.permute.xlu1 %4222  ;;  %4252 = vrot.lane.b32.xlu1 %v4959_v60, %s4471_s14 }
 0xc14   : > { %v1440_v13 = vsel %vm335_vm2, %v1411_v10, %v1427_v8  ;;  %v4225_v0 = vunpack.i.h.bf16 %v4223_v12  ;;  %v4224_v1 = vunpack.i.l.bf16 %v4223_v12  ;;  %3939 = vmatprep.subr.bf16.mxu0 %v3938_v25 }
 0xc15   : > { %3961 = vmatpush3.bf16.msra.mxu1 %v3958_v54  ;;  %v4989_v54 = vld [vmem:[%s5200_s3 + $0x120] sm:$0xf] }
 0xc16   : > { %v3966_v21 = vpack.c.bf16 %v4225_v0, %v4224_v1  ;;  %3963 = vmatprep.subr.bf16.mxu1 %v3962_v6 }
 0xc17   : > { %v1429_v14 = vpop.permute.xlu0 %1428 }
 0xc18   : > { %v1441_v15 = vsel %vm335_vm2, %v4908_v4, %v1429_v14 }
 0xc19   : > { %3965 = vmatpush3.bf16.msra.mxu1 %v3962_v6 }
 0xc1a   : > { %3967 = vmatprep.subr.bf16.mxu1 %v3966_v21 }
 0xc1b   : > { %v4233_v16 = vpop.permute.xlu0 %4232 }
 0xc1c   : > { %v4235_v2 = vunpack.i.h.bf16 %v4233_v16  ;;  %v4234_v19 = vunpack.i.l.bf16 %v4233_v16 }
 0xc1d   : > { %3969 = vmatpush3.bf16.msra.mxu1 %v3966_v21 }
 0xc1e   : > { %v3970_v20 = vpack.c.bf16 %v4235_v2, %v4234_v19 }
 0xc1f   : > { %v4243_v29 = vpop.permute.xlu0 %4242 }
 0xc20   : > { %3971 = vmatprep.subr.bf16.mxu1 %v3970_v20  ;;  %v4245_v26 = vunpack.i.h.bf16 %v4243_v29  ;;  %v4244_v27 = vunpack.i.l.bf16 %v4243_v29 }
 0xc22   : > { %v3974_v44 = vpack.c.bf16 %v4245_v26, %v4244_v27 }
 0xc23   : > { %v4248_v61 = vpop.permute.xlu0 %4247 }
 0xc24   : > { %v4250_v63 = vunpack.i.h.bf16 %v4248_v61  ;;  %v4249_v5 = vunpack.i.l.bf16 %v4248_v61 }
 0xc26   : > { %v3978_v8 = vpack.c.bf16 %v4250_v63, %v4249_v5 }
 0xc75   : > { %v1435_v32 = vpop.permute.xlu1 %1434 }
 0xc76   : > { %v1442_v4 = vsel %vm1112_vm4, %v1440_v13, %v1435_v32 }
 0xc77   : > { %3670 = vmatprep.mubr.msk.f32.mxu0 %vm1465_vm11, %v1442_v4  ;;  %3713 = vmatprep.mubr.msk.f32.mxu1 %vm1465_vm11, %v1442_v4 }
 0xc79   : > { %v1437_v28 = vpop.permute.xlu1 %1436 }
 0xc7a   : > { %v1443_v43 = vsel %vm1112_vm4, %v1441_v15, %v1437_v28 }
 0xc7b   : > { %3671 = vmatmul.mubr.msk.f32.vlgmr.msra.gmra.mrb[12].mxu0 %vm1465_vm11, %v1443_v43  ;;  %3714 = vmatmul.mubr.msk.f32.vlgmr.msra.gmra.mrb[14].mxu1 %vm1465_vm11, %v1443_v43 }
 0xc7c   : > { %3941 = vmatpush3.bf16.msra.mxu0 %v3938_v25  ;;  %3681 = vmatprep.mubr.msk.f32.mxu0 %vm335_vm2, %v4804_v18 }
 0xc7d   : > { %3973 = vmatpush3.bf16.msra.mxu1 %v3970_v20  ;;  %3724 = vmatprep.mubr.msk.f32.mxu1 %vm335_vm2, %v4804_v18  ;;  %v4238_v35 = vpop.permute.xlu1 %4237 }
 0xc7e   : > { %v4240_v48 = vunpack.i.h.bf16 %v4238_v35  ;;  %v4239_v50 = vunpack.i.l.bf16 %v4238_v35  ;;  %3975 = vmatprep.subr.bf16.mxu1 %v3974_v44 }
 0xc80   : > { %v3942_v52 = vpack.c.bf16 %v4240_v48, %v4239_v50 }
 0xc81   : > { %3977 = vmatpush3.bf16.msra.mxu1 %v3974_v44  ;;  %v1463_v59 = vpop.permute.xlu1 %1462 }
 0xc82   : > { %3943 = vmatprep.subr.bf16.mxu0 %v3942_v52 }
 0xc83   : > { %3945 = vmatpush3.bf16.msra.mxu0 %v3942_v52 }
 0xc84   : > { %3725 = vmatmul.mubr.msk.f32.vlgmr.msra.gmra.mrb[14].mxu1 %vm335_vm2, %v4802_v17  ;;  %3727 = vmatprep.subr.mxu0 %v4469_v9 }
 0xc85   : > { %v4253_v62 = vpop.permute.xlu1 %4252 }
 0xc86   : > { %3682 = vmatmul.mubr.msk.f32.vlgmr.msra.gmra.mrb[12].mxu0 %vm335_vm2, %v4802_v17  ;;  %v4255_v25 = vunpack.i.h.bf16 %v4253_v62  ;;  %v4254_v6 = vunpack.i.l.bf16 %v4253_v62 }
 0xc87   : > { %3728 = vmatpush3.msk.msra.mxu0 %vm1655_vm7, %v4989_v54  ;;  %3729 = vmatprep.mubr.msk.f32.mxu0 %vm4468_vm0, %v4469_v9 }
 0xc88   : > { %v3982_v10 = vpack.c.bf16 %v4255_v25, %v4254_v6  ;;  %3979 = vmatprep.subr.bf16.mxu0 %v3978_v8  ;;  %v2071_v25 = vpop.permute.xlu0 %2070 }
 0xc8a   : > { %3730 = vmatmul.mubr.msk.f32.vlgmr.msra.gmra.mrb[14].mxu0 %vm1652_vm9, %v4914_v36 }
 0xc8b   : > { %3981 = vmatpush3.bf16.msra.mxu0 %v3978_v8 }
 0xc8c   : > { %3983 = vmatprep.subr.bf16.mxu0 %v3982_v10 }
 0xc8f   : > { %3985 = vmatpush3.bf16.msra.mxu0 %v3982_v10 }
 0xcdb   : > { %v1724_v57 = vpop.f32.mrb[12].mxu1 }
 0xcdc   : > { %v3688_v58 = vpop.f32.mrb[13].mxu1  ;;  %v1731_v1 = vrot.slane %v1724_v57, %v4657_v34 }
 0xd57   : > { %v3726_v12 = vpop.f32.mrb[14].mxu1 }
 0xd58   : > { %v1940_v13 = vpop.f32.mrb[15].mxu1  ;;  %v4080_v20 = vadd.f32 %v3726_v12, %v4969_v24 }
 0xd59   : > { %v3683_v0 = vpop.f32.mrb[12].mxu0  ;;  %v4081_v29 = vadd.f32 %v4969_v24, %v1940_v13 }
 0xd5a   : > { %v4078_v21 = vadd.f32 %v3683_v0, %v1463_v59  ;;  %v1631_v14 = vpop.f32.mrb[13].mxu0 }
 0xd5b   : > { %v4079_v15 = vadd.f32 %v1631_v14, %v1463_v59 }
 0xd5c   : > { %v1733_v16 = vadd.f32 %v4078_v21, %v1731_v1 }
 0xd5d   : > { %v1732_v2 = vadd.f32 %v4079_v15, %v1731_v1  ;;  %v2021_v19 = vpop.f32.mrb[14].mxu0 }
 0xd5e   : > { %v2028_v32 = vrot.slane %v2021_v19, %v4657_v34  ;;  %v3731_v4 = vpop.f32.mrb[15].mxu0 }
 0xd60   : > { %v2029_v26 = vadd.f32 %v4081_v29, %v2028_v32  ;;  %v2030_v27 = vadd.f32 %v4080_v20, %v2028_v32 }
 0xd62   : > { %v3345_v28 = vmul.f32 -1.442695, %v2029_v26  ;;  %v3346_v43 = vmul.f32 -1.442695, %v2030_v27 }
 0xd64   : > { %4367 = vpow2.f32 %v3345_v28 }
 0xd65   : > { %4369 = vpow2.f32 %v3346_v43 }
 0xd66   : > { %4371 = vtanh.f32 %v1733_v16 }
 0xd67   : > { %4373 = vtanh.f32 %v1732_v2 }
 0xd6e   : > { %v4368_v44 = vpop.eup %4367 }
 0xd6f   : > { %v4370_v35 = vpop.eup %4369  ;;  %v2039_v48 = vadd.f32 1.0, %v4368_v44 }
 0xd70   : > { %v2040_v50 = vadd.f32 1.0, %v4370_v35  ;;  %v4372_v52 = vpop.eup %4371 }
 0xd71   : > { %4375 = vrcp.f32 %v2039_v48  ;;  %v4374_v57 = vpop.eup %4373 }
 0xd72   : > { %4377 = vrcp.f32 %v2040_v50 }
 0xd7b   : > { %v4376_v58 = vpop.eup %4375 }
 0xd7c   : > { %v4378_v59 = vpop.eup %4377  ;;  %v2045_v61 = vmul.f32 %v4376_v58, %v4374_v57 }
 0xd7d   : > { %v2046_v62 = vmul.f32 %v4378_v59, %v4372_v52 }
 0xd7e   : > { %v2047_v63 = vmul.f32 %v2045_v61, %v4813_v38 }
 0xd7f   : > { %v5005_v5 = vmul.f32 %v2046_v62, %v4811_v37 }
 0xd80   : > { %3740 = vmatprep.mubr.msk.f32.mxu0 %vm335_vm2, %v2047_v63  ;;  %3751 = vmatprep.mubr.msk.f32.mxu1 %vm335_vm2, %v2047_v63 }
 0xd81   : > { %3741 = vmatmul.mubr.msk.f32.vlgmr.msra.gmra.mrb[16].mxu0 %vm335_vm2, %v5005_v5 }
 0xe54   : > { %v3742_v6 = vpop.f32.mrb[16].mxu0 }
 0xe55   : > { %v2151_v8 = vadd.f32 %v3742_v6, %v2071_v25  ;;  %v2145_v10 = vpop.f32.mrb[17].mxu0 }
 0xe56   : > { %v2146_v12 = vadd.f32 %v2145_v10, %v2071_v25 }
 0xe57   : > { %2158 = vrot.lane.b32.xlu0 %v2151_v8, %s4471_s14 }
 0xe58   : > { %2156 = vrot.lane.b32.xlu1 %v2146_v12, %s4471_s14 }
 0xe5c   : > { %2260 = vrot.lane.b32.xlu1 %v4807_v31, %s4472_s23 }
 0xec9   : > { %v2159_v13 = vpop.permute.xlu0 %2158 }
 0xeca   : > { %v2163_v0 = vadd.f32 %v2159_v13, %v4819_v40  ;;  %v2157_v1 = vpop.permute.xlu1 %2156 }
 0xecb   : > { %v2162_v21 = vadd.f32 %v2157_v1, %v4816_v39 }
 0xecc   : > { %v2165_v14 = vmul.f32 %v2163_v0, %v4811_v37 }
 0xecd   : > { %v2164_v15 = vmul.f32 %v2162_v21, %v4813_v38 }
 0xece   : > { %v2261_v16 = vpop.permute.xlu1 %2260 }
 0xecf   : > { %v2263_v2 = vadd.f32 %v2261_v16, %v2164_v15  ;;  %v2264_v19 = vadd.f32 %v2261_v16, %v2165_v14 }
 0xed1   : > { %2271 = vrot.lane.b32.xlu1 %v2264_v19, %s4471_s14  ;;  %2269 = vrot.lane.b32.xlu0 %v2263_v2, %s4471_s14 }
 0xed5   : > { %4257 = vrot.lane.b32.xlu0 %v4941_v47, %s4472_s23  ;;  %4262 = vrot.lane.b32.xlu1 %v4959_v60, %s4472_s23 }
 0xed9   : > { %4267 = vrot.lane.b32.xlu0 %v4831_v46, %s4471_s14  ;;  %4272 = vrot.lane.b32.xlu1 %v4831_v46, %s4472_s23 }
 0xedd   : > { %4277 = vrot.lane.b32.xlu0 %v4843_v49, %s4471_s14  ;;  %2514 = vrot.lane.b32.xlu1 %v4989_v54, %s4470_s13 }
 0xee1   : > { %4282 = vrot.lane.b32.xlu0 %v4843_v49, %s4472_s23  ;;  %4287 = vrot.lane.b32.xlu1 %v4869_v23, %s4471_s14 }
 0xee5   : > { %4292 = vrot.lane.b32.xlu0 %v4869_v23, %s4472_s23  ;;  %4297 = vrot.lane.b32.xlu1 %v4865_v56, %s4471_s14 }
 0xee9   : > { %4302 = vrot.lane.b32.xlu0 %v4865_v56, %s4472_s23  ;;  %4307 = vrot.lane.b32.xlu1 %v4881_v55, %s4471_s14 }
 0xeed   : > { %4312 = vrot.lane.b32.xlu0 %v4881_v55, %s4472_s23  ;;  %4317 = vrot.lane.b32.xlu1 %v4893_v3, %s4471_s14 }
 0xef1   : > { %2301 = vrot.lane.b32.xlu0 %v2264_v19, %s4470_s13  ;;  %4322 = vrot.lane.b32.xlu1 %v4893_v3, %s4472_s23 }
 0xef5   : > { %2299 = vrot.lane.b32.xlu0 %v2263_v2, %s4470_s13 }
 0xf43   : > { %v2272_v31 = vpop.permute.xlu1 %2271  ;;  %v2270_v39 = vpop.permute.xlu0 %2269 }
 0xf44   : > { %v2276_v40 = vrot.slane %v2272_v31, 6  ;;  %v2289_v46 = vrot.slane %v2272_v31, 2  ;;  %v2275_v49 = vrot.slane %v2270_v39, 6  ;;  %v2288_v56 = vrot.slane %v2270_v39, 2 }
 0xf46   : > { %v2291_v23 = vsel %vm2290_vm12, %v2288_v56, %v2289_v46  ;;  %v2292_v55 = vsel %vm2290_vm12, %v2289_v46, %v2288_v56  ;;  %v5056_v20 = vsel %vm2277_vm14, %v2275_v49, %v2276_v40  ;;  %v5058_v29 = vsel %vm2277_vm14, %v2276_v40, %v2275_v49 }
 0xf47   : > { %2307 = vrot.lane.b32.xlu1 %v2291_v23, %s4471_s14  ;;  %v4258_v3 = vpop.permute.xlu0 %4257  ;;  %v2298_v32 = vsel %vm2287_vm13, %v2292_v55, 0.0  ;;  %v4263_v4 = vpop.permute.xlu1 %4262 }
 0xf48   : > { %v4260_v26 = vunpack.i.h.bf16 %v4258_v3  ;;  %v4259_v27 = vunpack.i.l.bf16 %v4258_v3  ;;  %2309 = vrot.lane.b32.xlu0 %v2298_v32, %s4471_s14  ;;  %v4265_v11 = vunpack.i.h.bf16 %v4263_v4  ;;  %v4264_v28 = vunpack.i.l.bf16 %v4263_v4 }
 0xf4a   : > { %v3986_v43 = vpack.c.bf16 %v4260_v26, %v4259_v27  ;;  %v3990_v44 = vpack.c.bf16 %v4265_v11, %v4264_v28 }
 0xf4b   : > { %4327 = vrot.lane.b32.xlu1 %v4941_v47, %s4470_s13  ;;  %v4268_v35 = vpop.permute.xlu0 %4267  ;;  %v4273_v48 = vpop.permute.xlu1 %4272 }
 0xf4c   : > { %v4270_v50 = vunpack.i.h.bf16 %v4268_v35  ;;  %v4269_v52 = vunpack.i.l.bf16 %v4268_v35  ;;  %3987 = vmatprep.subr.bf16.mxu1 %v3986_v43  ;;  %4332 = vrot.lane.b32.xlu0 %v4959_v60, %s4470_s13  ;;  %v4275_v58 = vunpack.i.h.bf16 %v4273_v48  ;;  %v4274_v59 = vunpack.i.l.bf16 %v4273_v48 }
 0xf4d   : > { %3989 = vmatpush3.bf16.msra.mxu1 %v3986_v43  ;;  %v4018_v35 = vpack.c.bf16 %v4931_v42, %v4926_v41 }
 0xf4e   : > { %v3994_v57 = vpack.c.bf16 %v4270_v50, %v4269_v52  ;;  %3991 = vmatprep.subr.bf16.mxu1 %v3990_v44  ;;  %v4026_v60 = vpack.c.bf16 %v4275_v58, %v4274_v59  ;;  %v2284_v59 = vsel %vm2265_vm15, %v5058_v29, 0.0 }
 0xf4f   : > { %v4278_v61 = vpop.permute.xlu0 %4277  ;;  %2797 = vrot.lane.b32.xlu1 %v4989_v54, %s4471_s14  ;;  %v2515_v62 = vpop.permute.xlu1 %2514 }
 0xf50   : > { %v4280_v63 = vunpack.i.h.bf16 %v4278_v61  ;;  %v4279_v47 = vunpack.i.l.bf16 %v4278_v61  ;;  %3995 = vmatprep.subr.bf16.mxu0 %v3994_v57  ;;  %2630 = vrot.lane.b32.xlu0 %v4969_v24, %s4471_s14 }
 0xf51   : > { %3993 = vmatpush3.bf16.msra.mxu1 %v3990_v44  ;;  %3997 = vmatpush3.bf16.msra.mxu0 %v3994_v57 }
 0xf52   : > { %v3998_v25 = vpack.c.bf16 %v4280_v63, %v4279_v47  ;;  %3792 = vmatprep.subr.mxu1 %v4469_v9  ;;  %v4022_v47 = vpack.c.bf16 %v4951_v22, %v4946_v53 }
 0xf53   : > { %v4283_v6 = vpop.permute.xlu0 %4282  ;;  %v4288_v8 = vpop.permute.xlu1 %4287  ;;  %2353 = vrot.lane.b32.xlu1 %v4969_v24, %s4470_s13 }
 0xf54   : > { %v4285_v10 = vunpack.i.h.bf16 %v4283_v6  ;;  %v4284_v54 = vunpack.i.l.bf16 %v4283_v6  ;;  %3752 = vmatmul.mubr.msk.f32.vlgmr.msra.gmra.mrb[16].mxu1 %vm335_vm2, %v5005_v5  ;;  %v4290_v12 = vunpack.i.h.bf16 %v4288_v8  ;;  %v4289_v13 = vunpack.i.l.bf16 %v4288_v8  ;;  %3999 = vmatprep.subr.bf16.mxu0 %v3998_v25 }
 0xf55   : > { %3793 = vmatpush3.msk.msra.mxu1 %vm1655_vm7, %v2515_v62  ;;  %3794 = vmatprep.mubr.msk.f32.mxu1 %vm4468_vm0, %v4469_v9 }
 0xf56   : > { %v4030_v0 = vpack.c.bf16 %v4285_v10, %v4284_v54  ;;  %4027 = vmatprep.subr.bf16.mxu1 %v4026_v60  ;;  %v4002_v1 = vpack.c.bf16 %v4290_v12, %v4289_v13  ;;  %4001 = vmatpush3.bf16.msra.mxu0 %v3998_v25  ;;  %v2895_v12 = vld [vmem:[%s5200_s3 + $0x100] sm:$0xff]  ;;  %v2896_v13 = vld [vmem:[%s5200_s3 + $0x108] sm:$0xff] }
 0xf57   : > { %v4293_v21 = vpop.permute.xlu0 %4292  ;;  %v4298_v14 = vpop.permute.xlu1 %4297 }
 0xf58   : > { %v4295_v24 = vunpack.i.h.bf16 %v4293_v21  ;;  %v4294_v15 = vunpack.i.l.bf16 %v4293_v21  ;;  %3795 = vmatmul.mubr.msk.f32.vlgmr.msra.gmra.mrb[18].mxu1 %vm1652_vm9, %v4914_v36  ;;  %v4300_v5 = vunpack.i.h.bf16 %v4298_v14  ;;  %v4299_v16 = vunpack.i.l.bf16 %v4298_v14  ;;  %4003 = vmatprep.subr.bf16.mxu0 %v4002_v1  ;;  %v3349_v14 = vld [vmem:[%s5200_s3 + $0x158] ss:$0 sm:$0xff] }
 0xf59   : > { %4029 = vmatpush3.bf16.msra.mxu1 %v4026_v60  ;;  %v4336_v21 = vpack.i.bf16 %v2896_v13, %v2895_v12  ;;  %2900 = vrot.lane.b32.xlu1 %v3349_v14, %s4470_s13 }
 0xf5a   : > { %v4034_v2 = vpack.c.bf16 %v4295_v24, %v4294_v15  ;;  %v4006_v19 = vpack.c.bf16 %v4300_v5, %v4299_v16  ;;  %4031 = vmatprep.subr.bf16.mxu1 %v4030_v0  ;;  %4005 = vmatpush3.bf16.msra.mxu0 %v4002_v1  ;;  %v4058_v1 = vpack.c.bf16 %v2896_v13, %v2895_v12 }
 0xf5b   : > { %v4303_v31 = vpop.permute.xlu0 %4302  ;;  %v4308_v39 = vpop.permute.xlu1 %4307  ;;  %4337 = vrot.lane.b32.xlu0 %v4336_v21, %s4470_s13 }
 0xf5c   : > { %v4305_v40 = vunpack.i.h.bf16 %v4303_v31  ;;  %v4304_v46 = vunpack.i.l.bf16 %v4303_v31  ;;  %v4310_v49 = vunpack.i.h.bf16 %v4308_v39  ;;  %v4309_v56 = vunpack.i.l.bf16 %v4308_v39  ;;  %4007 = vmatprep.subr.bf16.mxu0 %v4006_v19 }
 0xf5d   : > { %4033 = vmatpush3.bf16.msra.mxu1 %v4030_v0  ;;  %v2897_v0 = vld [vmem:[%s5200_s3 + $0x110] sm:$0xff]  ;;  %3130 = vrot.lane.b32.xlu1 %v4921_v30, %s4470_s13 }
 0xf5e   : > { %v4038_v23 = vpack.c.bf16 %v4305_v40, %v4304_v46  ;;  %v4010_v55 = vpack.c.bf16 %v4310_v49, %v4309_v56  ;;  %4035 = vmatprep.subr.bf16.mxu1 %v4034_v2  ;;  %4009 = vmatpush3.bf16.msra.mxu0 %v4006_v19 }
 0xf5f   : > { %v4313_v3 = vpop.permute.xlu0 %4312  ;;  %v4318_v32 = vpop.permute.xlu1 %4317 }
 0xf60   : > { %v4315_v4 = vunpack.i.h.bf16 %v4313_v3  ;;  %v4314_v26 = vunpack.i.l.bf16 %v4313_v3  ;;  %v4320_v27 = vunpack.i.h.bf16 %v4318_v32  ;;  %v4319_v11 = vunpack.i.l.bf16 %v4318_v32  ;;  %4011 = vmatprep.subr.bf16.mxu0 %v4010_v55 }
 0xf61   : > { %4037 = vmatpush3.bf16.msra.mxu1 %v4034_v2  ;;  %3210 = vrot.lane.b32.xlu1 %v4852_v51, %s4470_s13 }
 0xf62   : > { %v4042_v28 = vpack.c.bf16 %v4315_v4, %v4314_v26  ;;  %v4014_v43 = vpack.c.bf16 %v4320_v27, %v4319_v11  ;;  %4039 = vmatprep.subr.bf16.mxu1 %v4038_v23  ;;  %4013 = vmatpush3.bf16.msra.mxu0 %v4010_v55 }
 0xf63   : > { %v4323_v44 = vpop.permute.xlu1 %4322  ;;  %v2302_v57 = vpop.permute.xlu0 %2301 }
 0xf64   : > { %v4325_v48 = vunpack.i.h.bf16 %v4323_v44  ;;  %v4324_v50 = vunpack.i.l.bf16 %v4323_v44  ;;  %4015 = vmatprep.subr.bf16.mxu0 %v4014_v43  ;;  %v2314_v42 = vsel %vm335_vm2, %v5056_v20, %v2302_v57 }
 0xf65   : > { %4041 = vmatpush3.bf16.msra.mxu1 %v4038_v23 }
 0xf66   : > { %v4046_v52 = vpack.c.bf16 %v4325_v48, %v4324_v50  ;;  %4043 = vmatprep.subr.bf16.mxu1 %v4042_v28  ;;  %4017 = vmatpush3.bf16.msra.mxu0 %v4014_v43 }
 0xf67   : > { %4019 = vmatprep.subr.bf16.mxu0 %v4018_v35  ;;  %v2300_v58 = vpop.permute.xlu0 %2299 }
 0xf68   : > { %v2313_v61 = vsel %vm335_vm2, %v2284_v59, %v2300_v58 }
 0xf69   : > { %4045 = vmatpush3.bf16.msra.mxu1 %v4042_v28 }
 0xf6a   : > { %4047 = vmatprep.subr.bf16.mxu1 %v4046_v52 }
 0xf6d   : > { %4049 = vmatpush3.bf16.msra.mxu1 %v4046_v52 }
 0xfb9   : > { %v2308_v41 = vpop.permute.xlu1 %2307 }
 0xfba   : > { %v2315_v62 = vsel %vm1112_vm4, %v2313_v61, %v2308_v41  ;;  %v2310_v63 = vpop.permute.xlu0 %2309 }
 0xfbb   : > { %v2316_v25 = vsel %vm1112_vm4, %v2314_v42, %v2310_v63  ;;  %3778 = vmatprep.mubr.msk.f32.mxu0 %vm1465_vm11, %v2315_v62  ;;  %3821 = vmatprep.mubr.msk.f32.mxu1 %vm1465_vm11, %v2315_v62 }
 0xfbc   : > { %3779 = vmatmul.mubr.msk.f32.vlgmr.msra.gmra.mrb[18].mxu0 %vm1465_vm11, %v2316_v25  ;;  %3822 = vmatmul.mubr.msk.f32.vlgmr.msra.gmra.mrb[20].mxu1 %vm1465_vm11, %v2316_v25 }
 0xfbd   : > { %v4328_v33 = vpop.permute.xlu1 %4327  ;;  %4021 = vmatpush3.bf16.msra.mxu0 %v4018_v35  ;;  %3789 = vmatprep.mubr.msk.f32.mxu0 %vm335_vm2, %v4804_v18 }
 0xfbe   : > { %v4330_v20 = vunpack.i.h.bf16 %v4328_v33  ;;  %v4329_v29 = vunpack.i.l.bf16 %v4328_v33  ;;  %3832 = vmatprep.mubr.msk.f32.mxu1 %vm335_vm2, %v4804_v18  ;;  %4023 = vmatprep.subr.bf16.mxu0 %v4022_v47  ;;  %v4333_v53 = vpop.permute.xlu0 %4332 }
 0xfbf   : > { %v4335_v22 = vunpack.i.h.bf16 %v4333_v53  ;;  %v4334_v60 = vunpack.i.l.bf16 %v4333_v53 }
 0xfc0   : > { %v4050_v6 = vpack.c.bf16 %v4330_v20, %v4329_v29 }
 0xfc1   : > { %v4054_v8 = vpack.c.bf16 %v4335_v22, %v4334_v60  ;;  %4025 = vmatpush3.bf16.msra.mxu0 %v4022_v47  ;;  %v2798_v10 = vpop.permute.xlu1 %2797 }
 0xfc2   : > { %4051 = vmatprep.subr.bf16.mxu1 %v4050_v6  ;;  %3835 = vmatprep.subr.mxu0 %v4469_v9  ;;  %v2631_v49 = vpop.permute.xlu0 %2630 }
 0xfc3   : > { %4053 = vmatpush3.bf16.msra.mxu1 %v4050_v6 }
 0xfc4   : > { %3790 = vmatmul.mubr.msk.f32.vlgmr.msra.gmra.mrb[18].mxu0 %vm335_vm2, %v4802_v17  ;;  %4055 = vmatprep.subr.bf16.mxu1 %v4054_v8 }
 0xfc5   : > { %3836 = vmatpush3.msk.msra.mxu0 %vm1655_vm7, %v2798_v10  ;;  %3837 = vmatprep.mubr.msk.f32.mxu0 %vm4468_vm0, %v4469_v9  ;;  %v2354_v15 = vpop.permute.xlu1 %2353 }
 0xfc7   : > { %4057 = vmatpush3.bf16.msra.mxu1 %v4054_v8 }
 0xfc8   : > { %3838 = vmatmul.mubr.msk.f32.vlgmr.msra.gmra.mrb[20].mxu0 %vm1652_vm9, %v4914_v36  ;;  %v2898_v36 = vld [vmem:[%s5200_s3 + $0x118] sm:$0xff]  ;;  %4059 = vmatprep.subr.bf16.mxu1 %v4058_v1 }
 0xfc9   : > { %v4341_v24 = vpack.i.bf16 %v2898_v36, %v2897_v0 }
 0xfca   : > { %3833 = vmatmul.mubr.msk.f32.vlgmr.msra.gmra.mrb[20].mxu1 %vm335_vm2, %v4802_v17  ;;  %v4062_v17 = vpack.c.bf16 %v2898_v36, %v2897_v0 }
 0xfcb   : > { %4061 = vmatpush3.bf16.msra.mxu1 %v4058_v1  ;;  %4342 = vrot.lane.b32.xlu0 %v4341_v24, %s4470_s13  ;;  %v2901_v29 = vpop.permute.xlu1 %2900  ;;  %s212_s13 = sand.u32 1, %s4457_s16  }
 0xfcc   : > { %4063 = vmatprep.subr.bf16.mxu1 %v4062_v17  ;;  %v4084_v53 = vadd.f32 %v3349_v14, %v2901_v29  ;;  %s213_s7 = scalar_lea.vmem [#allocation2], %s212_s13  ;;  %s3217_s14 = scalar_lea.sflag [#allocation3], %s212_s13 }
 0xfcd   : > { %v4338_v48 = vpop.permute.xlu0 %4337  ;;  %s3229_s10 = sshll.u32 %s213_s7, 4  ;;  %s5157_s10 = int_to_ptr.vmem [resolvable:$true] %s3229_s10 }
 0xfce   : > { %v4340_v50 = vunpack.i.h.bf16 %v4338_v48  ;;  %s4403_s23 = scalar_lea.vmem %s5157_s10, 16  ;;  %p4410_p0 = scmp.lt.s32.totalorder %s5157_s10, %s4408_s20 }
 0xfcf   : > { %4065 = vmatpush3.bf16.msra.mxu1 %v4062_v17  ;;  %p4404_p11 = scmp.ne.s32.totalorder %s5157_s10, %s4403_s23  ;;  %p4411_p1 = scmp.lt.s32.totalorder %s4409_s22, %s4403_s23 }
 0xfd1   : > { %p4405_p12 = pnand %p4404_p11, %p4548_p5  ;;  %p4412_p2 = por %p4411_p1, %p4410_p0 }
 0xfd3   : > { %p4406_p13 = pneg %p4405_p12 }
 0xfd5   : > { %p4413_p3 = pnand %p4412_p2, %p4406_p13 }
0x102b   : > { %v2584_v18 = vpop.f32.mrb[18].mxu1 }
0x102c   : > { %v3796_v54 = vpop.f32.mrb[19].mxu1  ;;  %v2591_v16 = vrot.slane %v2584_v18, %v4657_v34 }
0x103d   : > { %v4343_v59 = vpop.permute.xlu0 %4342 }
0x103e   : > { %v4345_v41 = vunpack.i.h.bf16 %v4343_v59  ;;  %v4344_v42 = vunpack.i.l.bf16 %v4343_v59 }
0x1040   : > { %v4070_v25 = vpack.c.bf16 %v4345_v41, %v4344_v42 }
0x1097   : > { %v3791_v5 = vpop.f32.mrb[18].mxu0 }
0x1098   : > { %v4086_v2 = vadd.f32 %v3791_v5, %v2354_v15  ;;  %v2503_v19 = vpop.f32.mrb[19].mxu0 }
0x1099   : > { %v4087_v31 = vadd.f32 %v2503_v19, %v2354_v15 }
0x109a   : > { %v2593_v39 = vadd.f32 %v4086_v2, %v2591_v16 }
0x109b   : > { %v2592_v40 = vadd.f32 %v4087_v31, %v2591_v16  ;;  %v2867_v46 = vpop.f32.mrb[20].mxu0 }
0x109c   : > { %v3839_v56 = vpop.f32.mrb[21].mxu0  ;;  %v2874_v55 = vrot.slane %v2867_v46, %v4657_v34  ;;  %v4339_v34 = vunpack.i.l.bf16 %v4338_v48  ;;  %v3131_v48 = vpop.permute.xlu1 %3130 }
0x109d   : > { %v3834_v23 = vpop.f32.mrb[20].mxu1 }
0x109e   : > { %v4088_v3 = vadd.f32 %v3834_v23, %v2631_v49  ;;  %v2786_v32 = vpop.f32.mrb[21].mxu1  ;;  %v4066_v57 = vpack.c.bf16 %v4340_v50, %v4339_v34 }
0x109f   : > { %v4089_v4 = vadd.f32 %v2786_v32, %v2631_v49 }
0x10a0   : > { %v2876_v26 = vadd.f32 %v4088_v3, %v2874_v55  ;;  %4067 = vmatprep.subr.bf16.mxu0 %v4066_v57 }
0x10a1   : > { %v2875_v51 = vadd.f32 %v4089_v4, %v2874_v55  ;;  %4069 = vmatpush3.bf16.msra.mxu0 %v4066_v57 }
0x10a2   : > { %v3365_v27 = vmul.f32 -1.442695, %v2876_v26  ;;  %4071 = vmatprep.subr.bf16.mxu0 %v4070_v25 }
0x10a3   : > { %v3364_v11 = vmul.f32 -1.442695, %v2875_v51 }
0x10a4   : > { %4379 = vpow2.f32 %v3365_v27 }
0x10a5   : > { %4381 = vpow2.f32 %v3364_v11  ;;  %4073 = vmatpush3.bf16.msra.mxu0 %v4070_v25 }
0x10a6   : > { %4383 = vtanh.f32 %v2593_v39  ;;  %4074 = vmatprep.subr.bf16.mxu0 %v4467_v7  ;;  %v4483_v7 = vmov 64  }
0x10a7   : > { %4385 = vtanh.f32 %v2592_v40  ;;  %4346 = vset.pattern.permute.xlu0 %v4483_v7 }
0x10a8   : > { %3127 = vperm.xlu0 %4346, %v4921_v30  }
0x10ae   : > { %v4380_v28 = vpop.eup %4379 }
0x10af   : > { %v4382_v43 = vpop.eup %4381  ;;  %v2886_v44 = vadd.f32 1.0, %v4380_v28 }
0x10b0   : > { %v2885_v35 = vadd.f32 1.0, %v4382_v43  ;;  %v4384_v52 = vpop.eup %4383 }
0x10b1   : > { %4387 = vrcp.f32 %v2886_v44  ;;  %v4386_v58 = vpop.eup %4385 }
0x10b2   : > { %4389 = vrcp.f32 %v2885_v35 }
0x10bb   : > { %v4388_v61 = vpop.eup %4387 }
0x10bc   : > { %v4390_v62 = vpop.eup %4389  ;;  %v2892_v63 = vmul.f32 %v4388_v61, %v4384_v52  ;;  %v3211_v52 = vpop.permute.xlu1 %3210 }
0x10bd   : > { %v2891_v47 = vmul.f32 %v4390_v62, %v4386_v58 }
0x10be   : > { %v2894_v20 = vmul.f32 %v2892_v63, %v4811_v37 }
0x10bf   : > { %v2893_v33 = vmul.f32 %v2891_v47, %v4813_v38 }
0x10c1   : > { %3848 = vmatprep.mubr.msk.f32.mxu1 %vm335_vm2, %v2893_v33 }
0x10c2   : > { %3849 = vmatmul.mubr.msk.f32.vlgmr.msra.gmra.mrb[16].mxu1 %vm335_vm2, %v2894_v20 }
0x1127   : > { %v3128_v50 = vpop.permute.xlu0 %3127 }
0x1195   : > { %v3850_v22 = vpop.f32.mrb[16].mxu1 }
0x1196   : > { %v4083_v60 = vadd.f32 %v4084_v53, %v3850_v22  ;;  %v2975_v6 = vpop.f32.mrb[17].mxu1 }
0x1197   : > { %v4085_v8 = vadd.f32 %v4084_v53, %v2975_v6 }
0x1198   : > { %v2987_v18 = vmul.f32 %v4083_v60, %v4811_v37 }
0x1199   : > { %v2986_v10 = vmul.f32 %v4085_v8, %v4813_v38 }
0x119b   : > { %3859 = vmatprep.mubr.msk.f32.mxu0 %vm335_vm2, %v2986_v10 }
0x119c   : > { %3860 = vmatmul.mubr.msk.f32.vlgmr.msra.gmra.mrb[22].mxu0 %vm335_vm2, %v2987_v18 }
0x119d   : > { %3866 = vmatprep.mubr.msk.f32.mxu0 %vm4468_vm0, %v4469_v9 }
0x126f   : > { %v3861_v54 = vpop.f32.mrb[22].mxu0 }
0x1270   : > { %v3082_v12 = vadd.f32 %v3861_v54, %v4937_v45  ;;  %v3076_v13 = vpop.f32.mrb[23].mxu0 }
0x1271   : > { %v3077_v0 = vadd.f32 %v3076_v13, %v4937_v45 }
0x1272   : > { %v3092_v38 = vand.u32 2147483647, %v3082_v12  ;;  %v3086_v49 = vmax.f32 %v3082_v12, 0.0  ;;  %vm3088_vm3 = vcmp.ne.f32.partialorder %v3082_v12, %v3082_v12 }
0x1273   : > { %v3091_v1 = vand.u32 2147483647, %v3077_v0  ;;  %v3085_v3 = vmax.f32 %v3077_v0, 0.0  ;;  %vm3087_vm4 = vcmp.ne.f32.partialorder %v3077_v0, %v3077_v0 }
0x1274   : > { %v3094_v37 = vsub.f32 0.0, %v3092_v38 }
0x1275   : > { %v3093_v36 = vsub.f32 0.0, %v3091_v1 }
0x1276   : > { %v3097_v17 = vmul.f32 1.442695, %v3094_v37 }
0x1277   : > { %v3095_v21 = vmul.f32 1.442695, %v3093_v36 }
0x1278   : > { %4391 = vpow2.f32 %v3097_v17 }
0x1279   : > { %4393 = vpow2.f32 %v3095_v21 }
0x1282   : > { %v4392_v14 = vpop.eup %4391 }
0x1283   : > { %v4394_v9 = vpop.eup %4393  ;;  %v3108_v24 = vadd.f32 1.0, %v4392_v14  ;;  %v3111_v30 = vmul.f32 -0.5, %v4392_v14  ;;  %v3114_v2 = vand.u32 2147483647, %v4392_v14 }
0x1284   : > { %v3099_v15 = vadd.f32 1.0, %v4394_v9  ;;  %v3102_v5 = vmul.f32 -0.5, %v4394_v9  ;;  %v3105_v45 = vand.u32 2147483647, %v4394_v9 }
0x1285   : > { %4395 = vlog2.f32 %v3108_v24  ;;  %v3112_v16 = vadd.f32 1.0, %v3111_v30  ;;  %vm3115_vm0 = vcmp.lt.f32.partialorder %v3114_v2, 0.0004427343 }
0x1286   : > { %4397 = vlog2.f32 %v3099_v15  ;;  %v3103_v19 = vadd.f32 1.0, %v3102_v5  ;;  %vm3106_vm1 = vcmp.lt.f32.partialorder %v3105_v45, 0.0004427343 }
0x1287   : > { %v3113_v46 = vmul.f32 %v4392_v14, %v3112_v16 }
0x1288   : > { %v3104_v23 = vmul.f32 %v4394_v9, %v3103_v19 }
0x128f   : > { %v4396_v31 = vpop.eup %4395 }
0x1290   : > { %v4398_v39 = vpop.eup %4397  ;;  %v3110_v40 = vmul.f32 0.6931472, %v4396_v31 }
0x1291   : > { %v3101_v56 = vmul.f32 0.6931472, %v4398_v39 }
0x1292   : > { %v3116_v55 = vsel %vm3115_vm0, %v3113_v46, %v3110_v40 }
0x1293   : > { %v3118_v32 = vadd.f32 %v3116_v55, %v3086_v49  ;;  %v3107_v4 = vsel %vm3106_vm1, %v3104_v23, %v3101_v56 }
0x1294   : > { %v3117_v26 = vadd.f32 %v3107_v4, %v3085_v3 }
0x1295   : > { %v3120_v51 = vsel %vm3088_vm3, %v3082_v12, %v3118_v32 }
0x1296   : > { %4399 = vtanh.f32 %v3120_v51  ;;  %v3119_v27 = vsel %vm3087_vm4, %v3077_v0, %v3117_v26 }
0x1297   : > { %4401 = vtanh.f32 %v3119_v27 }
0x12a0   : > { %v4400_v11 = vpop.eup %4399 }
0x12a1   : > { %v4402_v28 = vpop.eup %4401  ;;  %v3124_v43 = vmul.f32 %v4400_v11, %v3082_v12 }
0x12a2   : > { %v3123_v44 = vmul.f32 %v4402_v28, %v3077_v0 }
0x12a4   : > { %v4075_v35 = vpack.c.bf16 %v3124_v43, %v3123_v44 }
0x12a6   : > { %4077 = vmatpush3.bf16.xpose.msk.msra.mxu0 %vm4076_vm5, %v4075_v35 }
0x12ad   : > { %3867 = vmatmul.mubr.msk.f32.vlgmr.msra.gmra.mrb[24].mxu0 %vm335_vm2, %v3131_v48 }
0x1380   : > { %v3206_v34 = vpop.f32.mrb[24].mxu0 }
0x1381   : > { %v3207_v57 = vadd.f32 %v3206_v34, %v3128_v50  ;;  %v3868_v58 = vpop.f32.mrb[25].mxu0 }
0x1383   : > { %v3213_v59 = vmul.f32 %v3211_v52, %v3207_v57 }
0x1385   : > { %3215 = vst.msk [vmem:[%s213_s7] sm:$0x1] %vm3214_vm6, %v3213_v59 }
0x1386   : > { %4416 = shalt.err (!%p4413_p3)
}
0x1387   : > { %s4417_s28 = scalar_lea.hbm %s5155_s12, 16  ;;  %s4421_s5 = scalar_lea.hbm %s5201_s4, 32 }
0x1388   : > { %p4418_p4 = scmp.ne.s32.totalorder %s5155_s12, %s4417_s28  ;;  %p4422_p9 = scmp.lt.u32.totalorder %s5155_s12, %s5201_s4 }
0x1389   : > { %p4423_p10 = scmp.lt.u32.totalorder %s4421_s5, %s4417_s28  ;;  %p4425_p12 = scmp.lt.u32.totalorder %s4417_s28, %s5155_s12 }
0x138a   : > { %p4419_p7 = pnand %p4418_p4, %p4548_p5 }
0x138b   : > { %p4424_p11 = por %p4423_p10, %p4422_p9 }
0x138c   : > { %p4420_p8 = pneg %p4419_p7 }
0x138d   : > { %p4426_p13 = por %p4425_p12, %p4424_p11 }
0x138f   : > { %p4427_p0 = pnand %p4426_p13, %p4420_p8 }
0x1391   : > { %4430 = shalt.err (!%p4427_p0)
}
0x1392   : > { %4100 = dma.vmem_to_hbm [thread:$0]  (%p4548_p5), %s5157_s10, 16, %s5155_s12, %s3217_s14  }
0x1393 PF: > { %p4106_p1 = scmp.ge.s32.totalorder %s4465_s18, 2  ;;  %s3241_s13 = sand.u32 1, %s4453_s15  }
0x1394   : > { %s3242_s9 = scalar_lea.sflag [#allocation3], %s3241_s13 }
0x1395   : > { %p4103_p2 = pnand %p4106_p1, %p4552_p6 }
0x1397   : > { %4448 = dma.done.wait (!%p4103_p2), %s3242_s9, 16  }
0x1398   : > { %4450 = vsyncadd (!%p4103_p2), %s3242_s9, 4294967280  ;;  %p14_p3 = scmp.ge.s32.totalorder %s4535_s21, 4   ;;  %s5204_s15 = smov %s4457_s16 }
0x1399   : > { %s5205_s16 = smov %s4461_s17  ;;  %s5206_s17 = smov %s4546_s24 }
0x139a   : > { %s5207_s18 = smov %s4535_s21  ;;  %16 = sbr.rel (!%p14_p3) target bundleno = 3 (0x3), region = 77 }
0x13a1   :  { %3246 = vsyncpa [#allocation3], 1 }
0x13a2   :  { %3248 = vsyncpa [#allocation3 + $0x1], 1 }

</bundles_post_ra>
